<compile_context>
chip_gen: v5e
topology: v5e:2x2
jax: 0.10.0
libtpu: 0.0.40
codegen_flags: <defaults>
</compile_context>

<pallas_src>
import functools

import jax
import jax.numpy as jnp
from jax.experimental import pallas as pl
from jax.experimental.pallas import tpu as pltpu


# =============================================================================
# Kernel A: fused conv1 -> relu -> pool -> conv2 -> relu -> pool -> conv3 -> relu -> pool
# =============================================================================
def _shift_down(a):
    """b[r] = a[r-1], zero at r == 0 (left zero-padding of the sequence)."""
    if a.shape[0] == 1:
        return jnp.zeros_like(a)
    return jnp.concatenate([jnp.zeros_like(a[:1]), a[:-1]], axis=0)


def _shift_up(a):
    """b[r] = a[r+1], zero at r == rows-1 (right zero-padding of the sequence)."""
    if a.shape[0] == 1:
        return jnp.zeros_like(a)
    return jnp.concatenate([a[1:], jnp.zeros_like(a[:1])], axis=0)


def _conv_relu_pool_phases(phases, w_all, b, cout):
    """One Conv1d(k=3, pad=1) -> ReLU -> MaxPool1d(2,2) stage on a phase-decomposed input.

    phases: list of P arrays, each (M, Cin); phases[j][r] = activation at position P*r + j.
    w_all:  (Cin, 3*Cout) bf16; column k*Cout + co holds torch_w[co, :, k].
    b:      (1, Cout) f32.
    Returns P // 2 phases, each (M, Cout) f32.
    """
    P = len(phases)
    # One MXU pass per phase computes all three taps at once.
    z = [jnp.dot(p.astype(jnp.bfloat16), w_all, preferred_element_type=jnp.float32)
         for p in phases]
    z0 = [zz[:, 0 * cout:1 * cout] for zz in z]   # tap applied to x[l-1]
    z1 = [zz[:, 1 * cout:2 * cout] for zz in z]   # tap applied to x[l]
    z2 = [zz[:, 2 * cout:3 * cout] for zz in z]   # tap applied to x[l+1]

    y = []
    for j in range(P):
        # conv output at l = P*r + j:  y[l] = z0[l-1] + z1[l] + z2[l+1]  (zeros at ends)
        left = z0[j - 1] if j > 0 else _shift_down(z0[P - 1])
        right = z2[j + 1] if j < P - 1 else _shift_up(z2[0])
        y.append(jnp.maximum(z1[j] + left + right + b, 0.0))   # + bias, ReLU

    # MaxPool1d(kernel=2, stride=2): positions 2m / 2m+1 live in adjacent phases,
    # so pooling is a pure elementwise max.
    return [jnp.maximum(y[2 * i], y[2 * i + 1]) for i in range(P // 2)]


def _conv_stack_kernel(x_ref, w1_ref, b1_ref, w2_ref, b2_ref, w3_ref, b3_ref,
                       o_ref, *, c_in):
    # x_ref: (M, 8*Cin) bf16 -- 8 consecutive positions packed along lanes;
    # batch dim squeezed away by the BlockSpec.
    x = x_ref[...]
    phases = [x[:, j * c_in:(j + 1) * c_in] for j in range(8)]             # 8 x (M, Cin)
    phases = _conv_relu_pool_phases(phases, w1_ref[...], b1_ref[...], 8)   # 4 x (M, 8)
    phases = _conv_relu_pool_phases(phases, w2_ref[...], b2_ref[...], 16)  # 2 x (M, 16)
    phases = _conv_relu_pool_phases(phases, w3_ref[...], b3_ref[...], 32)  # 1 x (M, 32)
    # (M, 32) row-major == the flatten order consumed by the MLP head.
    o_ref[...] = phases[0].astype(o_ref.dtype)


def conv_stack(x_packed, cw1, cb1, cw2, cb2, cw3, cb3):
    """x_packed: (N, L//8, 8*Cin) bf16 -> (N, L//8, 32) bf16 features."""
    n, m, lanes = x_packed.shape
    c_in = cw1.shape[0]
    assert lanes == 8 * c_in

    def const_spec(arr):                      # weights: constant block index => DMA'd once
        nd = arr.ndim
        return pl.BlockSpec(arr.shape, lambda b, _nd=nd: (0,) * _nd)

    return pl.pallas_call(
        functools.partial(_conv_stack_kernel, c_in=c_in),
        out_shape=jax.ShapeDtypeStruct((n, m, 32), jnp.bfloat16),
        grid=(n,),
        in_specs=[
            pl.BlockSpec((None, m, lanes), lambda b: (b, 0, 0)),
            const_spec(cw1), const_spec(cb1),
            const_spec(cw2), const_spec(cb2),
            const_spec(cw3), const_spec(cb3),
        ],
        out_specs=pl.BlockSpec((None, m, 32), lambda b: (b, 0, 0)),
        compiler_params=pltpu.CompilerParams(
            dimension_semantics=("parallel",),        # v7x: shard batch over 2 TCs
            vmem_limit_bytes=32 * 1024 * 1024,        # safe on v5e/v6e/v7x
        ),
    )(x_packed, cw1, cb1, cw2, cb2, cw3, cb3)


# =============================================================================
# Kernel B: MLP head  fc1 (K-tiled, f32 accumulator) -> dropout(identity) -> fc2
# =============================================================================
def _mlp_head_kernel(x_ref, w1_ref, b1_ref, w2_ref, b2_ref, o_ref, acc_ref):
    k = pl.program_id(1)

    @pl.when(k == 0)
    def _init():
        acc_ref[...] = jnp.zeros_like(acc_ref)

    # fc1 partial product for this K tile (bf16 operands, f32 accumulation).
    acc_ref[...] += jnp.dot(x_ref[...], w1_ref[...],
                            preferred_element_type=jnp.float32)

    @pl.when(k == pl.num_programs(1) - 1)
    def _finalize():
        h = acc_ref[...] + b1_ref[...]
        # TODO(synk): nn.Dropout(0.5) is stochastic in train mode; modeled as identity
        # (eval mode). Train parity would use pltpu.prng_seed + pltpu.prng_random_bits.
        o_ref[...] = (jnp.dot(h.astype(jnp.bfloat16), w2_ref[...],
                              preferred_element_type=jnp.float32)
                      + b2_ref[...]).astype(o_ref.dtype)


def _largest_divisor_tile(dim, candidates):
    for t in candidates:
        if dim % t == 0:
            return t
    return dim


def mlp_head(feats, w1, b1, w2, b2):
    """feats: (N, F) bf16; w1: (F, 1024) bf16 (rows in the same flatten order);
    b1: (1, 1024) f32; w2: (1024, C) bf16; b2: (1, C) f32.  Returns (N, C) f32."""
    n_rows, feat_dim = feats.shape
    hidden = w1.shape[1]
    n_cls = w2.shape[1]

    # 128-aligned K tiles (v5e MXU native); double-buffered bf16 blocks stay far below the
    # 16 MiB (v5e) / 32 MiB (v6e, v7x) default scoped-VMEM limits.
    tile_k = _largest_divisor_tile(feat_dim, (1024, 512, 256, 128))
    tile_n = n_rows if n_rows <= 128 else _largest_divisor_tile(n_rows, (128, 64, 32, 16, 8))

    return pl.pallas_call(
        _mlp_head_kernel,
        out_shape=jax.ShapeDtypeStruct((n_rows, n_cls), jnp.float32),
        grid=(n_rows // tile_n, feat_dim // tile_k),
        in_specs=[
            pl.BlockSpec((tile_n, tile_k), lambda i, k: (i, k)),   # activations
            pl.BlockSpec((tile_k, hidden), lambda i, k: (k, 0)),   # fc1 weight (streamed)
            pl.BlockSpec((1, hidden), lambda i, k: (0, 0)),        # fc1 bias
            pl.BlockSpec((hidden, n_cls), lambda i, k: (0, 0)),    # fc2 weight
            pl.BlockSpec((1, n_cls), lambda i, k: (0, 0)),         # fc2 bias
        ],
        out_specs=pl.BlockSpec((tile_n, n_cls), lambda i, k: (i, 0)),
        scratch_shapes=[pltpu.VMEM((tile_n, hidden), jnp.float32)],   # fc1 accumulator
        compiler_params=pltpu.CompilerParams(
            dimension_semantics=("parallel", "arbitrary"),
            vmem_limit_bytes=32 * 1024 * 1024,
        ),
    )(feats, w1, b1, w2, b2)


# =============================================================================
# Parameters: PyTorch-layout init + one-time kernel-friendly re-layout
# =============================================================================
def _uniform(key, shape, bound):
    return jax.random.uniform(key, shape, jnp.float32, minval=-bound, maxval=bound)


def init_params(key, in_shape, n_classes):
    """PyTorch-layout parameters with PyTorch-default-like uniform init."""
    c_in, length = in_shape
    keys = jax.random.split(key, 10)
    params = {}

    def conv_init(kw, kb, cout, cin, k):
        bound = 1.0 / jnp.sqrt(cin * k)
        return _uniform(kw, (cout, cin, k), bound), _uniform(kb, (cout,), bound)

    params["conv1_w"], params["conv1_b"] = conv_init(keys[0], keys[1], 8, c_in, 3)
    params["conv2_w"], params["conv2_b"] = conv_init(keys[2], keys[3], 16, 8, 3)
    params["conv3_w"], params["conv3_b"] = conv_init(keys[4], keys[5], 32, 16, 3)

    fc1_in = (length // 8) * 32
    b1 = 1.0 / jnp.sqrt(fc1_in)
    params["fc1_w"] = _uniform(keys[6], (1024, fc1_in), b1)
    params["fc1_b"] = _uniform(keys[7], (1024,), b1)
    b2 = 1.0 / jnp.sqrt(1024)
    params["fc2_w"] = _uniform(keys[8], (n_classes, 1024), b2)
    params["fc2_b"] = _uniform(keys[9], (n_classes,), b2)
    return params


def prep_params(params, in_shape, n_classes):
    """One-time weight re-layout (outside the jitted forward)."""
    _, length = in_shape
    l3 = length // 8

    def prep_conv(w, b):
        cout, cin, k = w.shape                         # torch Conv1d: (Cout, Cin, K)
        # (Cin, K*Cout): column k*Cout + co = w[co, :, k]  (all 3 taps in one MXU pass)
        w_all = jnp.transpose(w, (1, 2, 0)).reshape(cin, k * cout)
        return w_all.astype(jnp.bfloat16), b.reshape(1, cout).astype(jnp.float32)

    p = {}
    p["c1w"], p["c1b"] = prep_conv(params["conv1_w"], params["conv1_b"])
    p["c2w"], p["c2b"] = prep_conv(params["conv2_w"], params["conv2_b"])
    p["c3w"], p["c3b"] = prep_conv(params["conv3_w"], params["conv3_b"])

    # PyTorch flattens NCL (feature index c*L3 + l); the conv kernel emits features in
    # NLC order (l*32 + c).  Permute fc1 rows once here so the forward needs neither an
    # activation transpose nor a per-call weight transpose.
    hidden = params["fc1_w"].shape[0]
    w1 = params["fc1_w"].reshape(hidden, 32, l3)                      # [j, c, l]
    w1 = jnp.transpose(w1, (2, 1, 0)).reshape(l3 * 32, hidden)        # row l*32 + c
    p["f1w"] = w1.astype(jnp.bfloat16)
    p["f1b"] = params["fc1_b"].reshape(1, hidden).astype(jnp.float32)
    p["f2w"] = jnp.transpose(params["fc2_w"]).astype(jnp.bfloat16)    # (1024, n_classes)
    p["f2b"] = params["fc2_b"].reshape(1, n_classes).astype(jnp.float32)
    return p


# =============================================================================
# Forward pass (matches SimpleCNN.forward, eval mode)
# =============================================================================
@jax.jit
def simple_cnn_forward(prepped, x_ncl):
    n, c_in, length = x_ncl.shape
    # Single XLA transpose NCL -> NLC fused with the bf16 cast; the follow-up reshape
    # packing 8 consecutive positions into lanes is contiguous, i.e. free.
    x = jnp.transpose(x_ncl, (0, 2, 1)).astype(jnp.bfloat16)       # (N, L, Cin)
    x = x.reshape(n, length // 8, 8 * c_in)                         # (N, L/8, 8*Cin)
    feats = conv_stack(x, prepped["c1w"], prepped["c1b"],
                       prepped["c2w"], prepped["c2b"],
                       prepped["c3w"], prepped["c3b"])              # (N, L/8, 32) bf16
    feats = feats.reshape(n, -1)                                    # flatten (free, contiguous)
    return mlp_head(feats, prepped["f1w"], prepped["f1b"],
                    prepped["f2w"], prepped["f2b"])                 # (N, n_classes) f32


if __name__ == "__main__":
    in_shape = (4, 16)     # (channels, length); length must be divisible by 8
    n_classes = 10
    batch = 2
    assert in_shape[1] % 8 == 0, "length must be divisible by 8 (3x MaxPool1d(2))"

    key = jax.random.PRNGKey(0)
    k_x, k_p = jax.random.split(key)
    x = jax.random.normal(k_x, (batch, in_shape[0], in_shape[1]), dtype=jnp.float32)

    params = init_params(k_p, in_shape, n_classes)
    prepped = prep_params(params, in_shape, n_classes)

    out = simple_cnn_forward(prepped, x)
    out = jax.block_until_ready(out)
    assert out.shape == (batch, n_classes), out.shape
    assert bool(jnp.all(jnp.isfinite(out)))
    print("KERNEL_OK")
</pallas_src>

<mosaic_0001>
module attributes {stable_mosaic.version = 11 : i64} {
  func.func @_conv_stack_kernel(%arg0: i32, %arg1: memref<1x2x32xbf16, #tpu.memory_space<vmem>>, %arg2: memref<4x24xbf16, #tpu.memory_space<vmem>>, %arg3: memref<1x8xf32, #tpu.memory_space<vmem>>, %arg4: memref<8x48xbf16, #tpu.memory_space<vmem>>, %arg5: memref<1x16xf32, #tpu.memory_space<vmem>>, %arg6: memref<16x96xbf16, #tpu.memory_space<vmem>>, %arg7: memref<1x32xf32, #tpu.memory_space<vmem>>, %arg8: memref<1x2x32xbf16, #tpu.memory_space<vmem>>) attributes {dimension_semantics = [#tpu.dimension_semantics<parallel>], iteration_bounds = array<i64: 2>, scalar_prefetch = 0 : i64, scratch_operands = 0 : i64, tpu.core_type = #tpu.core_type<tc>, window_params = [{transform_indices = @transform_0, window_bounds = array<i64: 1, 2, 32>}, {pipeline_mode = #tpu.pipeline_mode<synchronous>, transform_indices = @transform_1, window_bounds = array<i64: 4, 24>}, {pipeline_mode = #tpu.pipeline_mode<synchronous>, transform_indices = @transform_2, window_bounds = array<i64: 1, 8>}, {pipeline_mode = #tpu.pipeline_mode<synchronous>, transform_indices = @transform_3, window_bounds = array<i64: 8, 48>}, {pipeline_mode = #tpu.pipeline_mode<synchronous>, transform_indices = @transform_4, window_bounds = array<i64: 1, 16>}, {pipeline_mode = #tpu.pipeline_mode<synchronous>, transform_indices = @transform_5, window_bounds = array<i64: 16, 96>}, {pipeline_mode = #tpu.pipeline_mode<synchronous>, transform_indices = @transform_6, window_bounds = array<i64: 1, 32>}, {transform_indices = @transform_7, window_bounds = array<i64: 1, 2, 32>}]} {
    %c0 = arith.constant 0 : index
    %c0_0 = arith.constant 0 : index
    %c0_1 = arith.constant 0 : index
    %0 = vector.load %arg1[%c0, %c0_0, %c0_1] : memref<1x2x32xbf16, #tpu.memory_space<vmem>>, vector<1x2x32xbf16>
    %1 = vector.shape_cast %0 : vector<1x2x32xbf16> to vector<2x32xbf16>
    %2 = vector.extract_strided_slice %1 {offsets = [0, 0], sizes = [2, 4], strides = [1, 1]} : vector<2x32xbf16> to vector<2x4xbf16>
    %3 = vector.extract_strided_slice %1 {offsets = [0, 4], sizes = [2, 4], strides = [1, 1]} : vector<2x32xbf16> to vector<2x4xbf16>
    %4 = vector.extract_strided_slice %1 {offsets = [0, 8], sizes = [2, 4], strides = [1, 1]} : vector<2x32xbf16> to vector<2x4xbf16>
    %5 = vector.extract_strided_slice %1 {offsets = [0, 12], sizes = [2, 4], strides = [1, 1]} : vector<2x32xbf16> to vector<2x4xbf16>
    %6 = vector.extract_strided_slice %1 {offsets = [0, 16], sizes = [2, 4], strides = [1, 1]} : vector<2x32xbf16> to vector<2x4xbf16>
    %7 = vector.extract_strided_slice %1 {offsets = [0, 20], sizes = [2, 4], strides = [1, 1]} : vector<2x32xbf16> to vector<2x4xbf16>
    %8 = vector.extract_strided_slice %1 {offsets = [0, 24], sizes = [2, 4], strides = [1, 1]} : vector<2x32xbf16> to vector<2x4xbf16>
    %9 = vector.extract_strided_slice %1 {offsets = [0, 28], sizes = [2, 4], strides = [1, 1]} : vector<2x32xbf16> to vector<2x4xbf16>
    %c0_2 = arith.constant 0 : index
    %c0_3 = arith.constant 0 : index
    %10 = vector.load %arg2[%c0_2, %c0_3] : memref<4x24xbf16, #tpu.memory_space<vmem>>, vector<4x24xbf16>
    %c0_4 = arith.constant 0 : index
    %c0_5 = arith.constant 0 : index
    %11 = vector.load %arg3[%c0_4, %c0_5] : memref<1x8xf32, #tpu.memory_space<vmem>>, vector<1x8xf32>
    %cst = arith.constant dense<0.000000e+00> : vector<2x24xf32>
    %12 = tpu.matmul %2, %10, %cst {dimension_numbers = #tpu.dot_dimension_numbers<[1], [0], [0], [1], [0, 0, 1, 1], [], []>} : vector<2x4xbf16>, vector<4x24xbf16>, vector<2x24xf32> -> vector<2x24xf32>
    %cst_6 = arith.constant dense<0.000000e+00> : vector<2x24xf32>
    %13 = tpu.matmul %3, %10, %cst_6 {dimension_numbers = #tpu.dot_dimension_numbers<[1], [0], [0], [1], [0, 0, 1, 1], [], []>} : vector<2x4xbf16>, vector<4x24xbf16>, vector<2x24xf32> -> vector<2x24xf32>
    %cst_7 = arith.constant dense<0.000000e+00> : vector<2x24xf32>
    %14 = tpu.matmul %4, %10, %cst_7 {dimension_numbers = #tpu.dot_dimension_numbers<[1], [0], [0], [1], [0, 0, 1, 1], [], []>} : vector<2x4xbf16>, vector<4x24xbf16>, vector<2x24xf32> -> vector<2x24xf32>
    %cst_8 = arith.constant dense<0.000000e+00> : vector<2x24xf32>
    %15 = tpu.matmul %5, %10, %cst_8 {dimension_numbers = #tpu.dot_dimension_numbers<[1], [0], [0], [1], [0, 0, 1, 1], [], []>} : vector<2x4xbf16>, vector<4x24xbf16>, vector<2x24xf32> -> vector<2x24xf32>
    %cst_9 = arith.constant dense<0.000000e+00> : vector<2x24xf32>
    %16 = tpu.matmul %6, %10, %cst_9 {dimension_numbers = #tpu.dot_dimension_numbers<[1], [0], [0], [1], [0, 0, 1, 1], [], []>} : vector<2x4xbf16>, vector<4x24xbf16>, vector<2x24xf32> -> vector<2x24xf32>
    %cst_10 = arith.constant dense<0.000000e+00> : vector<2x24xf32>
    %17 = tpu.matmul %7, %10, %cst_10 {dimension_numbers = #tpu.dot_dimension_numbers<[1], [0], [0], [1], [0, 0, 1, 1], [], []>} : vector<2x4xbf16>, vector<4x24xbf16>, vector<2x24xf32> -> vector<2x24xf32>
    %cst_11 = arith.constant dense<0.000000e+00> : vector<2x24xf32>
    %18 = tpu.matmul %8, %10, %cst_11 {dimension_numbers = #tpu.dot_dimension_numbers<[1], [0], [0], [1], [0, 0, 1, 1], [], []>} : vector<2x4xbf16>, vector<4x24xbf16>, vector<2x24xf32> -> vector<2x24xf32>
    %cst_12 = arith.constant dense<0.000000e+00> : vector<2x24xf32>
    %19 = tpu.matmul %9, %10, %cst_12 {dimension_numbers = #tpu.dot_dimension_numbers<[1], [0], [0], [1], [0, 0, 1, 1], [], []>} : vector<2x4xbf16>, vector<4x24xbf16>, vector<2x24xf32> -> vector<2x24xf32>
    %20 = vector.extract_strided_slice %12 {offsets = [0, 0], sizes = [2, 8], strides = [1, 1]} : vector<2x24xf32> to vector<2x8xf32>
    %21 = vector.extract_strided_slice %13 {offsets = [0, 0], sizes = [2, 8], strides = [1, 1]} : vector<2x24xf32> to vector<2x8xf32>
    %22 = vector.extract_strided_slice %14 {offsets = [0, 0], sizes = [2, 8], strides = [1, 1]} : vector<2x24xf32> to vector<2x8xf32>
    %23 = vector.extract_strided_slice %15 {offsets = [0, 0], sizes = [2, 8], strides = [1, 1]} : vector<2x24xf32> to vector<2x8xf32>
    %24 = vector.extract_strided_slice %16 {offsets = [0, 0], sizes = [2, 8], strides = [1, 1]} : vector<2x24xf32> to vector<2x8xf32>
    %25 = vector.extract_strided_slice %17 {offsets = [0, 0], sizes = [2, 8], strides = [1, 1]} : vector<2x24xf32> to vector<2x8xf32>
    %26 = vector.extract_strided_slice %18 {offsets = [0, 0], sizes = [2, 8], strides = [1, 1]} : vector<2x24xf32> to vector<2x8xf32>
    %27 = vector.extract_strided_slice %19 {offsets = [0, 0], sizes = [2, 8], strides = [1, 1]} : vector<2x24xf32> to vector<2x8xf32>
    %28 = vector.extract_strided_slice %12 {offsets = [0, 8], sizes = [2, 8], strides = [1, 1]} : vector<2x24xf32> to vector<2x8xf32>
    %29 = vector.extract_strided_slice %13 {offsets = [0, 8], sizes = [2, 8], strides = [1, 1]} : vector<2x24xf32> to vector<2x8xf32>
    %30 = vector.extract_strided_slice %14 {offsets = [0, 8], sizes = [2, 8], strides = [1, 1]} : vector<2x24xf32> to vector<2x8xf32>
    %31 = vector.extract_strided_slice %15 {offsets = [0, 8], sizes = [2, 8], strides = [1, 1]} : vector<2x24xf32> to vector<2x8xf32>
    %32 = vector.extract_strided_slice %16 {offsets = [0, 8], sizes = [2, 8], strides = [1, 1]} : vector<2x24xf32> to vector<2x8xf32>
    %33 = vector.extract_strided_slice %17 {offsets = [0, 8], sizes = [2, 8], strides = [1, 1]} : vector<2x24xf32> to vector<2x8xf32>
    %34 = vector.extract_strided_slice %18 {offsets = [0, 8], sizes = [2, 8], strides = [1, 1]} : vector<2x24xf32> to vector<2x8xf32>
    %35 = vector.extract_strided_slice %19 {offsets = [0, 8], sizes = [2, 8], strides = [1, 1]} : vector<2x24xf32> to vector<2x8xf32>
    %36 = vector.extract_strided_slice %12 {offsets = [0, 16], sizes = [2, 8], strides = [1, 1]} : vector<2x24xf32> to vector<2x8xf32>
    %37 = vector.extract_strided_slice %13 {offsets = [0, 16], sizes = [2, 8], strides = [1, 1]} : vector<2x24xf32> to vector<2x8xf32>
    %38 = vector.extract_strided_slice %14 {offsets = [0, 16], sizes = [2, 8], strides = [1, 1]} : vector<2x24xf32> to vector<2x8xf32>
    %39 = vector.extract_strided_slice %15 {offsets = [0, 16], sizes = [2, 8], strides = [1, 1]} : vector<2x24xf32> to vector<2x8xf32>
    %40 = vector.extract_strided_slice %16 {offsets = [0, 16], sizes = [2, 8], strides = [1, 1]} : vector<2x24xf32> to vector<2x8xf32>
    %41 = vector.extract_strided_slice %17 {offsets = [0, 16], sizes = [2, 8], strides = [1, 1]} : vector<2x24xf32> to vector<2x8xf32>
    %42 = vector.extract_strided_slice %18 {offsets = [0, 16], sizes = [2, 8], strides = [1, 1]} : vector<2x24xf32> to vector<2x8xf32>
    %43 = vector.extract_strided_slice %19 {offsets = [0, 16], sizes = [2, 8], strides = [1, 1]} : vector<2x24xf32> to vector<2x8xf32>
    %cst_13 = arith.constant 0.000000e+00 : f32
    %44 = vector.broadcast %cst_13 : f32 to vector<1x8xf32>
    %45 = vector.extract_strided_slice %27 {offsets = [0, 0], sizes = [1, 8], strides = [1, 1]} : vector<2x8xf32> to vector<1x8xf32>
    %46 = tpu.concatenate %44, %45 in 0 : vector<1x8xf32>, vector<1x8xf32> -> vector<2x8xf32>
    %47 = arith.addf %28, %46 : vector<2x8xf32>
    %48 = arith.addf %47, %37 : vector<2x8xf32>
    %49 = vector.broadcast %11 : vector<1x8xf32> to vector<2x8xf32>
    %50 = arith.addf %48, %49 : vector<2x8xf32>
    %cst_14 = arith.constant 0.000000e+00 : f32
    %51 = vector.broadcast %cst_14 : f32 to vector<2x8xf32>
    %52 = arith.maximumf %50, %51 : vector<2x8xf32>
    %53 = arith.addf %29, %20 : vector<2x8xf32>
    %54 = arith.addf %53, %38 : vector<2x8xf32>
    %55 = vector.broadcast %11 : vector<1x8xf32> to vector<2x8xf32>
    %56 = arith.addf %54, %55 : vector<2x8xf32>
    %cst_15 = arith.constant 0.000000e+00 : f32
    %57 = vector.broadcast %cst_15 : f32 to vector<2x8xf32>
    %58 = arith.maximumf %56, %57 : vector<2x8xf32>
    %59 = arith.addf %30, %21 : vector<2x8xf32>
    %60 = arith.addf %59, %39 : vector<2x8xf32>
    %61 = vector.broadcast %11 : vector<1x8xf32> to vector<2x8xf32>
    %62 = arith.addf %60, %61 : vector<2x8xf32>
    %cst_16 = arith.constant 0.000000e+00 : f32
    %63 = vector.broadcast %cst_16 : f32 to vector<2x8xf32>
    %64 = arith.maximumf %62, %63 : vector<2x8xf32>
    %65 = arith.addf %31, %22 : vector<2x8xf32>
    %66 = arith.addf %65, %40 : vector<2x8xf32>
    %67 = vector.broadcast %11 : vector<1x8xf32> to vector<2x8xf32>
    %68 = arith.addf %66, %67 : vector<2x8xf32>
    %cst_17 = arith.constant 0.000000e+00 : f32
    %69 = vector.broadcast %cst_17 : f32 to vector<2x8xf32>
    %70 = arith.maximumf %68, %69 : vector<2x8xf32>
    %71 = arith.addf %32, %23 : vector<2x8xf32>
    %72 = arith.addf %71, %41 : vector<2x8xf32>
    %73 = vector.broadcast %11 : vector<1x8xf32> to vector<2x8xf32>
    %74 = arith.addf %72, %73 : vector<2x8xf32>
    %cst_18 = arith.constant 0.000000e+00 : f32
    %75 = vector.broadcast %cst_18 : f32 to vector<2x8xf32>
    %76 = arith.maximumf %74, %75 : vector<2x8xf32>
    %77 = arith.addf %33, %24 : vector<2x8xf32>
    %78 = arith.addf %77, %42 : vector<2x8xf32>
    %79 = vector.broadcast %11 : vector<1x8xf32> to vector<2x8xf32>
    %80 = arith.addf %78, %79 : vector<2x8xf32>
    %cst_19 = arith.constant 0.000000e+00 : f32
    %81 = vector.broadcast %cst_19 : f32 to vector<2x8xf32>
    %82 = arith.maximumf %80, %81 : vector<2x8xf32>
    %83 = arith.addf %34, %25 : vector<2x8xf32>
    %84 = arith.addf %83, %43 : vector<2x8xf32>
    %85 = vector.broadcast %11 : vector<1x8xf32> to vector<2x8xf32>
    %86 = arith.addf %84, %85 : vector<2x8xf32>
    %cst_20 = arith.constant 0.000000e+00 : f32
    %87 = vector.broadcast %cst_20 : f32 to vector<2x8xf32>
    %88 = arith.maximumf %86, %87 : vector<2x8xf32>
    %89 = vector.extract_strided_slice %36 {offsets = [1, 0], sizes = [1, 8], strides = [1, 1]} : vector<2x8xf32> to vector<1x8xf32>
    %cst_21 = arith.constant 0.000000e+00 : f32
    %90 = vector.broadcast %cst_21 : f32 to vector<1x8xf32>
    %91 = tpu.concatenate %89, %90 in 0 : vector<1x8xf32>, vector<1x8xf32> -> vector<2x8xf32>
    %92 = arith.addf %35, %26 : vector<2x8xf32>
    %93 = arith.addf %92, %91 : vector<2x8xf32>
    %94 = vector.broadcast %11 : vector<1x8xf32> to vector<2x8xf32>
    %95 = arith.addf %93, %94 : vector<2x8xf32>
    %cst_22 = arith.constant 0.000000e+00 : f32
    %96 = vector.broadcast %cst_22 : f32 to vector<2x8xf32>
    %97 = arith.maximumf %95, %96 : vector<2x8xf32>
    %98 = arith.maximumf %52, %58 : vector<2x8xf32>
    %99 = arith.maximumf %64, %70 : vector<2x8xf32>
    %100 = arith.maximumf %76, %82 : vector<2x8xf32>
    %101 = arith.maximumf %88, %97 : vector<2x8xf32>
    %c0_23 = arith.constant 0 : index
    %c0_24 = arith.constant 0 : index
    %102 = vector.load %arg4[%c0_23, %c0_24] : memref<8x48xbf16, #tpu.memory_space<vmem>>, vector<8x48xbf16>
    %c0_25 = arith.constant 0 : index
    %c0_26 = arith.constant 0 : index
    %103 = vector.load %arg5[%c0_25, %c0_26] : memref<1x16xf32, #tpu.memory_space<vmem>>, vector<1x16xf32>
    %104 = arith.truncf %98 : vector<2x8xf32> to vector<2x8xbf16>
    %cst_27 = arith.constant dense<0.000000e+00> : vector<2x48xf32>
    %105 = tpu.matmul %104, %102, %cst_27 {dimension_numbers = #tpu.dot_dimension_numbers<[1], [0], [0], [1], [0, 0, 1, 1], [], []>} : vector<2x8xbf16>, vector<8x48xbf16>, vector<2x48xf32> -> vector<2x48xf32>
    %106 = arith.truncf %99 : vector<2x8xf32> to vector<2x8xbf16>
    %cst_28 = arith.constant dense<0.000000e+00> : vector<2x48xf32>
    %107 = tpu.matmul %106, %102, %cst_28 {dimension_numbers = #tpu.dot_dimension_numbers<[1], [0], [0], [1], [0, 0, 1, 1], [], []>} : vector<2x8xbf16>, vector<8x48xbf16>, vector<2x48xf32> -> vector<2x48xf32>
    %108 = arith.truncf %100 : vector<2x8xf32> to vector<2x8xbf16>
    %cst_29 = arith.constant dense<0.000000e+00> : vector<2x48xf32>
    %109 = tpu.matmul %108, %102, %cst_29 {dimension_numbers = #tpu.dot_dimension_numbers<[1], [0], [0], [1], [0, 0, 1, 1], [], []>} : vector<2x8xbf16>, vector<8x48xbf16>, vector<2x48xf32> -> vector<2x48xf32>
    %110 = arith.truncf %101 : vector<2x8xf32> to vector<2x8xbf16>
    %cst_30 = arith.constant dense<0.000000e+00> : vector<2x48xf32>
    %111 = tpu.matmul %110, %102, %cst_30 {dimension_numbers = #tpu.dot_dimension_numbers<[1], [0], [0], [1], [0, 0, 1, 1], [], []>} : vector<2x8xbf16>, vector<8x48xbf16>, vector<2x48xf32> -> vector<2x48xf32>
    %112 = vector.extract_strided_slice %105 {offsets = [0, 0], sizes = [2, 16], strides = [1, 1]} : vector<2x48xf32> to vector<2x16xf32>
    %113 = vector.extract_strided_slice %107 {offsets = [0, 0], sizes = [2, 16], strides = [1, 1]} : vector<2x48xf32> to vector<2x16xf32>
    %114 = vector.extract_strided_slice %109 {offsets = [0, 0], sizes = [2, 16], strides = [1, 1]} : vector<2x48xf32> to vector<2x16xf32>
    %115 = vector.extract_strided_slice %111 {offsets = [0, 0], sizes = [2, 16], strides = [1, 1]} : vector<2x48xf32> to vector<2x16xf32>
    %116 = vector.extract_strided_slice %105 {offsets = [0, 16], sizes = [2, 16], strides = [1, 1]} : vector<2x48xf32> to vector<2x16xf32>
    %117 = vector.extract_strided_slice %107 {offsets = [0, 16], sizes = [2, 16], strides = [1, 1]} : vector<2x48xf32> to vector<2x16xf32>
    %118 = vector.extract_strided_slice %109 {offsets = [0, 16], sizes = [2, 16], strides = [1, 1]} : vector<2x48xf32> to vector<2x16xf32>
    %119 = vector.extract_strided_slice %111 {offsets = [0, 16], sizes = [2, 16], strides = [1, 1]} : vector<2x48xf32> to vector<2x16xf32>
    %120 = vector.extract_strided_slice %105 {offsets = [0, 32], sizes = [2, 16], strides = [1, 1]} : vector<2x48xf32> to vector<2x16xf32>
    %121 = vector.extract_strided_slice %107 {offsets = [0, 32], sizes = [2, 16], strides = [1, 1]} : vector<2x48xf32> to vector<2x16xf32>
    %122 = vector.extract_strided_slice %109 {offsets = [0, 32], sizes = [2, 16], strides = [1, 1]} : vector<2x48xf32> to vector<2x16xf32>
    %123 = vector.extract_strided_slice %111 {offsets = [0, 32], sizes = [2, 16], strides = [1, 1]} : vector<2x48xf32> to vector<2x16xf32>
    %cst_31 = arith.constant 0.000000e+00 : f32
    %124 = vector.broadcast %cst_31 : f32 to vector<1x16xf32>
    %125 = vector.extract_strided_slice %115 {offsets = [0, 0], sizes = [1, 16], strides = [1, 1]} : vector<2x16xf32> to vector<1x16xf32>
    %126 = tpu.concatenate %124, %125 in 0 : vector<1x16xf32>, vector<1x16xf32> -> vector<2x16xf32>
    %127 = arith.addf %116, %126 : vector<2x16xf32>
    %128 = arith.addf %127, %121 : vector<2x16xf32>
    %129 = vector.broadcast %103 : vector<1x16xf32> to vector<2x16xf32>
    %130 = arith.addf %128, %129 : vector<2x16xf32>
    %cst_32 = arith.constant 0.000000e+00 : f32
    %131 = vector.broadcast %cst_32 : f32 to vector<2x16xf32>
    %132 = arith.maximumf %130, %131 : vector<2x16xf32>
    %133 = arith.addf %117, %112 : vector<2x16xf32>
    %134 = arith.addf %133, %122 : vector<2x16xf32>
    %135 = vector.broadcast %103 : vector<1x16xf32> to vector<2x16xf32>
    %136 = arith.addf %134, %135 : vector<2x16xf32>
    %cst_33 = arith.constant 0.000000e+00 : f32
    %137 = vector.broadcast %cst_33 : f32 to vector<2x16xf32>
    %138 = arith.maximumf %136, %137 : vector<2x16xf32>
    %139 = arith.addf %118, %113 : vector<2x16xf32>
    %140 = arith.addf %139, %123 : vector<2x16xf32>
    %141 = vector.broadcast %103 : vector<1x16xf32> to vector<2x16xf32>
    %142 = arith.addf %140, %141 : vector<2x16xf32>
    %cst_34 = arith.constant 0.000000e+00 : f32
    %143 = vector.broadcast %cst_34 : f32 to vector<2x16xf32>
    %144 = arith.maximumf %142, %143 : vector<2x16xf32>
    %145 = vector.extract_strided_slice %120 {offsets = [1, 0], sizes = [1, 16], strides = [1, 1]} : vector<2x16xf32> to vector<1x16xf32>
    %cst_35 = arith.constant 0.000000e+00 : f32
    %146 = vector.broadcast %cst_35 : f32 to vector<1x16xf32>
    %147 = tpu.concatenate %145, %146 in 0 : vector<1x16xf32>, vector<1x16xf32> -> vector<2x16xf32>
    %148 = arith.addf %119, %114 : vector<2x16xf32>
    %149 = arith.addf %148, %147 : vector<2x16xf32>
    %150 = vector.broadcast %103 : vector<1x16xf32> to vector<2x16xf32>
    %151 = arith.addf %149, %150 : vector<2x16xf32>
    %cst_36 = arith.constant 0.000000e+00 : f32
    %152 = vector.broadcast %cst_36 : f32 to vector<2x16xf32>
    %153 = arith.maximumf %151, %152 : vector<2x16xf32>
    %154 = arith.maximumf %132, %138 : vector<2x16xf32>
    %155 = arith.maximumf %144, %153 : vector<2x16xf32>
    %c0_37 = arith.constant 0 : index
    %c0_38 = arith.constant 0 : index
    %156 = vector.load %arg6[%c0_37, %c0_38] : memref<16x96xbf16, #tpu.memory_space<vmem>>, vector<16x96xbf16>
    %c0_39 = arith.constant 0 : index
    %c0_40 = arith.constant 0 : index
    %157 = vector.load %arg7[%c0_39, %c0_40] : memref<1x32xf32, #tpu.memory_space<vmem>>, vector<1x32xf32>
    %158 = arith.truncf %154 : vector<2x16xf32> to vector<2x16xbf16>
    %cst_41 = arith.constant dense<0.000000e+00> : vector<2x96xf32>
    %159 = tpu.matmul %158, %156, %cst_41 {dimension_numbers = #tpu.dot_dimension_numbers<[1], [0], [0], [1], [0, 0, 1, 1], [], []>} : vector<2x16xbf16>, vector<16x96xbf16>, vector<2x96xf32> -> vector<2x96xf32>
    %160 = arith.truncf %155 : vector<2x16xf32> to vector<2x16xbf16>
    %cst_42 = arith.constant dense<0.000000e+00> : vector<2x96xf32>
    %161 = tpu.matmul %160, %156, %cst_42 {dimension_numbers = #tpu.dot_dimension_numbers<[1], [0], [0], [1], [0, 0, 1, 1], [], []>} : vector<2x16xbf16>, vector<16x96xbf16>, vector<2x96xf32> -> vector<2x96xf32>
    %162 = vector.extract_strided_slice %159 {offsets = [0, 0], sizes = [2, 32], strides = [1, 1]} : vector<2x96xf32> to vector<2x32xf32>
    %163 = vector.extract_strided_slice %161 {offsets = [0, 0], sizes = [2, 32], strides = [1, 1]} : vector<2x96xf32> to vector<2x32xf32>
    %164 = vector.extract_strided_slice %159 {offsets = [0, 32], sizes = [2, 32], strides = [1, 1]} : vector<2x96xf32> to vector<2x32xf32>
    %165 = vector.extract_strided_slice %161 {offsets = [0, 32], sizes = [2, 32], strides = [1, 1]} : vector<2x96xf32> to vector<2x32xf32>
    %166 = vector.extract_strided_slice %159 {offsets = [0, 64], sizes = [2, 32], strides = [1, 1]} : vector<2x96xf32> to vector<2x32xf32>
    %167 = vector.extract_strided_slice %161 {offsets = [0, 64], sizes = [2, 32], strides = [1, 1]} : vector<2x96xf32> to vector<2x32xf32>
    %cst_43 = arith.constant 0.000000e+00 : f32
    %168 = vector.broadcast %cst_43 : f32 to vector<1x32xf32>
    %169 = vector.extract_strided_slice %163 {offsets = [0, 0], sizes = [1, 32], strides = [1, 1]} : vector<2x32xf32> to vector<1x32xf32>
    %170 = tpu.concatenate %168, %169 in 0 : vector<1x32xf32>, vector<1x32xf32> -> vector<2x32xf32>
    %171 = arith.addf %164, %170 : vector<2x32xf32>
    %172 = arith.addf %171, %167 : vector<2x32xf32>
    %173 = vector.broadcast %157 : vector<1x32xf32> to vector<2x32xf32>
    %174 = arith.addf %172, %173 : vector<2x32xf32>
    %cst_44 = arith.constant 0.000000e+00 : f32
    %175 = vector.broadcast %cst_44 : f32 to vector<2x32xf32>
    %176 = arith.maximumf %174, %175 : vector<2x32xf32>
    %177 = vector.extract_strided_slice %166 {offsets = [1, 0], sizes = [1, 32], strides = [1, 1]} : vector<2x32xf32> to vector<1x32xf32>
    %cst_45 = arith.constant 0.000000e+00 : f32
    %178 = vector.broadcast %cst_45 : f32 to vector<1x32xf32>
    %179 = tpu.concatenate %177, %178 in 0 : vector<1x32xf32>, vector<1x32xf32> -> vector<2x32xf32>
    %180 = arith.addf %165, %162 : vector<2x32xf32>
    %181 = arith.addf %180, %179 : vector<2x32xf32>
    %182 = vector.broadcast %157 : vector<1x32xf32> to vector<2x32xf32>
    %183 = arith.addf %181, %182 : vector<2x32xf32>
    %cst_46 = arith.constant 0.000000e+00 : f32
    %184 = vector.broadcast %cst_46 : f32 to vector<2x32xf32>
    %185 = arith.maximumf %183, %184 : vector<2x32xf32>
    %186 = arith.maximumf %176, %185 : vector<2x32xf32>
    %187 = arith.truncf %186 : vector<2x32xf32> to vector<2x32xbf16>
    %c0_47 = arith.constant 0 : index
    %c0_48 = arith.constant 0 : index
    %c0_49 = arith.constant 0 : index
    %188 = vector.load %arg8[%c0_47, %c0_48, %c0_49] : memref<1x2x32xbf16, #tpu.memory_space<vmem>>, vector<1x2x32xbf16>
    %189 = vector.shape_cast %188 : vector<1x2x32xbf16> to vector<2x32xbf16>
    %190 = vector.shape_cast %187 : vector<2x32xbf16> to vector<1x2x32xbf16>
    tpu.vector_store %arg8[%c0_47, %c0_48, %c0_49], %190 {strides = array<i32>} : memref<1x2x32xbf16, #tpu.memory_space<vmem>>, vector<1x2x32xbf16>,
    return
  }
  func.func @transform_0(%arg0: i32) -> (i32, i32, i32) {
    %c0_i32 = arith.constant 0 : i32
    %c0_i32_0 = arith.constant 0 : i32
    %c0_i32_1 = arith.constant 0 : i32
    return %arg0, %c0_i32, %c0_i32_0 : i32, i32, i32
  }
  func.func @transform_1(%arg0: i32) -> (i32, i32) {
    %c0_i32 = arith.constant 0 : i32
    %c0_i32_0 = arith.constant 0 : i32
    %c0_i32_1 = arith.constant 0 : i32
    return %c0_i32, %c0_i32_0 : i32, i32
  }
  func.func @transform_2(%arg0: i32) -> (i32, i32) {
    %c0_i32 = arith.constant 0 : i32
    %c0_i32_0 = arith.constant 0 : i32
    %c0_i32_1 = arith.constant 0 : i32
    return %c0_i32, %c0_i32_0 : i32, i32
  }
  func.func @transform_3(%arg0: i32) -> (i32, i32) {
    %c0_i32 = arith.constant 0 : i32
    %c0_i32_0 = arith.constant 0 : i32
    %c0_i32_1 = arith.constant 0 : i32
    return %c0_i32, %c0_i32_0 : i32, i32
  }
  func.func @transform_4(%arg0: i32) -> (i32, i32) {
    %c0_i32 = arith.constant 0 : i32
    %c0_i32_0 = arith.constant 0 : i32
    %c0_i32_1 = arith.constant 0 : i32
    return %c0_i32, %c0_i32_0 : i32, i32
  }
  func.func @transform_5(%arg0: i32) -> (i32, i32) {
    %c0_i32 = arith.constant 0 : i32
    %c0_i32_0 = arith.constant 0 : i32
    %c0_i32_1 = arith.constant 0 : i32
    return %c0_i32, %c0_i32_0 : i32, i32
  }
  func.func @transform_6(%arg0: i32) -> (i32, i32) {
    %c0_i32 = arith.constant 0 : i32
    %c0_i32_0 = arith.constant 0 : i32
    %c0_i32_1 = arith.constant 0 : i32
    return %c0_i32, %c0_i32_0 : i32, i32
  }
  func.func @transform_7(%arg0: i32) -> (i32, i32, i32) {
    %c0_i32 = arith.constant 0 : i32
    %c0_i32_0 = arith.constant 0 : i32
    %c0_i32_1 = arith.constant 0 : i32
    return %arg0, %c0_i32, %c0_i32_0 : i32, i32, i32
  }
}

module attributes {stable_mosaic.version = 11 : i64} {
  func.func @_mlp_head_kernel(%arg0: i32, %arg1: i32, %arg2: memref<2x64xbf16, #tpu.memory_space<vmem>>, %arg3: memref<64x1024xbf16, #tpu.memory_space<vmem>>, %arg4: memref<1x1024xf32, #tpu.memory_space<vmem>>, %arg5: memref<1024x10xbf16, #tpu.memory_space<vmem>>, %arg6: memref<1x10xf32, #tpu.memory_space<vmem>>, %arg7: memref<2x10xf32, #tpu.memory_space<vmem>>, %arg8: memref<2x1024xf32, #tpu.memory_space<vmem>>) attributes {dimension_semantics = [#tpu.dimension_semantics<parallel>, #tpu.dimension_semantics<arbitrary>], iteration_bounds = array<i64: 1, 1>, scalar_prefetch = 0 : i64, scratch_operands = 1 : i64, tpu.core_type = #tpu.core_type<tc>, window_params = [{transform_indices = @transform_0, window_bounds = array<i64: 2, 64>}, {transform_indices = @transform_1, window_bounds = array<i64: 64, 1024>}, {pipeline_mode = #tpu.pipeline_mode<synchronous>, transform_indices = @transform_2, window_bounds = array<i64: 1, 1024>}, {pipeline_mode = #tpu.pipeline_mode<synchronous>, transform_indices = @transform_3, window_bounds = array<i64: 1024, 10>}, {pipeline_mode = #tpu.pipeline_mode<synchronous>, transform_indices = @transform_4, window_bounds = array<i64: 1, 10>}, {transform_indices = @transform_5, window_bounds = array<i64: 2, 10>}]} {
    %c0_i32 = arith.constant 0 : i32
    %0 = arith.cmpi eq, %arg1, %c0_i32 : i32
    %1 = arith.extui %0 : i1 to i32
    %c0_i32_0 = arith.constant 0 : i32
    %2 = arith.cmpi ne, %1, %c0_i32_0 : i32
    scf.if %2 {
      %cst_10 = arith.constant 0.000000e+00 : f32
      %12 = vector.broadcast %cst_10 : f32 to vector<2x1024xf32>
      %c0_11 = arith.constant 0 : index
      %c0_12 = arith.constant 0 : index
      %13 = vector.load %arg8[%c0_11, %c0_12] : memref<2x1024xf32, #tpu.memory_space<vmem>>, vector<2x1024xf32>
      tpu.vector_store %arg8[%c0_11, %c0_12], %12 {strides = array<i32>} : memref<2x1024xf32, #tpu.memory_space<vmem>>, vector<2x1024xf32>,
    } else {
    }
    %c0 = arith.constant 0 : index
    %c0_1 = arith.constant 0 : index
    %3 = vector.load %arg8[%c0, %c0_1] : memref<2x1024xf32, #tpu.memory_space<vmem>>, vector<2x1024xf32>
    %c0_2 = arith.constant 0 : index
    %c0_3 = arith.constant 0 : index
    %4 = vector.load %arg2[%c0_2, %c0_3] : memref<2x64xbf16, #tpu.memory_space<vmem>>, vector<2x64xbf16>
    %c0_4 = arith.constant 0 : index
    %c0_5 = arith.constant 0 : index
    %5 = vector.load %arg3[%c0_4, %c0_5] : memref<64x1024xbf16, #tpu.memory_space<vmem>>, vector<64x1024xbf16>
    %cst = arith.constant dense<0.000000e+00> : vector<2x1024xf32>
    %6 = tpu.matmul %4, %5, %cst {dimension_numbers = #tpu.dot_dimension_numbers<[1], [0], [0], [1], [0, 0, 1, 1], [], []>} : vector<2x64xbf16>, vector<64x1024xbf16>, vector<2x1024xf32> -> vector<2x1024xf32>
    %7 = arith.addf %3, %6 : vector<2x1024xf32>
    %c0_6 = arith.constant 0 : index
    %c0_7 = arith.constant 0 : index
    %8 = vector.load %arg8[%c0_6, %c0_7] : memref<2x1024xf32, #tpu.memory_space<vmem>>, vector<2x1024xf32>
    tpu.vector_store %arg8[%c0_6, %c0_7], %7 {strides = array<i32>} : memref<2x1024xf32, #tpu.memory_space<vmem>>, vector<2x1024xf32>,
    %c0_i32_8 = arith.constant 0 : i32
    %9 = arith.cmpi eq, %arg1, %c0_i32_8 : i32
    %10 = arith.extui %9 : i1 to i32
    %c0_i32_9 = arith.constant 0 : i32
    %11 = arith.cmpi ne, %10, %c0_i32_9 : i32
    scf.if %11 {
      %c0_10 = arith.constant 0 : index
      %c0_11 = arith.constant 0 : index
      %12 = vector.load %arg8[%c0_10, %c0_11] : memref<2x1024xf32, #tpu.memory_space<vmem>>, vector<2x1024xf32>
      %c0_12 = arith.constant 0 : index
      %c0_13 = arith.constant 0 : index
      %13 = vector.load %arg4[%c0_12, %c0_13] : memref<1x1024xf32, #tpu.memory_space<vmem>>, vector<1x1024xf32>
      %14 = vector.broadcast %13 : vector<1x1024xf32> to vector<2x1024xf32>
      %15 = arith.addf %12, %14 : vector<2x1024xf32>
      %16 = arith.truncf %15 : vector<2x1024xf32> to vector<2x1024xbf16>
      %c0_14 = arith.constant 0 : index
      %c0_15 = arith.constant 0 : index
      %17 = vector.load %arg5[%c0_14, %c0_15] : memref<1024x10xbf16, #tpu.memory_space<vmem>>, vector<1024x10xbf16>
      %cst_16 = arith.constant dense<0.000000e+00> : vector<2x10xf32>
      %18 = tpu.matmul %16, %17, %cst_16 {dimension_numbers = #tpu.dot_dimension_numbers<[1], [0], [0], [1], [0, 0, 1, 1], [], []>} : vector<2x1024xbf16>, vector<1024x10xbf16>, vector<2x10xf32> -> vector<2x10xf32>
      %c0_17 = arith.constant 0 : index
      %c0_18 = arith.constant 0 : index
      %19 = vector.load %arg6[%c0_17, %c0_18] : memref<1x10xf32, #tpu.memory_space<vmem>>, vector<1x10xf32>
      %20 = vector.broadcast %19 : vector<1x10xf32> to vector<2x10xf32>
      %21 = arith.addf %18, %20 : vector<2x10xf32>
      %c0_19 = arith.constant 0 : index
      %c0_20 = arith.constant 0 : index
      %22 = vector.load %arg7[%c0_19, %c0_20] : memref<2x10xf32, #tpu.memory_space<vmem>>, vector<2x10xf32>
      tpu.vector_store %arg7[%c0_19, %c0_20], %21 {strides = array<i32>} : memref<2x10xf32, #tpu.memory_space<vmem>>, vector<2x10xf32>,
    } else {
    }
    return
  }
  func.func @transform_0(%arg0: i32, %arg1: i32) -> (i32, i32) {
    %c0_i32 = arith.constant 0 : i32
    return %arg0, %arg1 : i32, i32
  }
  func.func @transform_1(%arg0: i32, %arg1: i32) -> (i32, i32) {
    %c0_i32 = arith.constant 0 : i32
    %c0_i32_0 = arith.constant 0 : i32
    return %arg1, %c0_i32 : i32, i32
  }
  func.func @transform_2(%arg0: i32, %arg1: i32) -> (i32, i32) {
    %c0_i32 = arith.constant 0 : i32
    %c0_i32_0 = arith.constant 0 : i32
    %c0_i32_1 = arith.constant 0 : i32
    return %c0_i32, %c0_i32_0 : i32, i32
  }
  func.func @transform_3(%arg0: i32, %arg1: i32) -> (i32, i32) {
    %c0_i32 = arith.constant 0 : i32
    %c0_i32_0 = arith.constant 0 : i32
    %c0_i32_1 = arith.constant 0 : i32
    return %c0_i32, %c0_i32_0 : i32, i32
  }
  func.func @transform_4(%arg0: i32, %arg1: i32) -> (i32, i32) {
    %c0_i32 = arith.constant 0 : i32
    %c0_i32_0 = arith.constant 0 : i32
    %c0_i32_1 = arith.constant 0 : i32
    return %c0_i32, %c0_i32_0 : i32, i32
  }
  func.func @transform_5(%arg0: i32, %arg1: i32) -> (i32, i32) {
    %c0_i32 = arith.constant 0 : i32
    %c0_i32_0 = arith.constant 0 : i32
    return %arg0, %c0_i32 : i32, i32
  }
}

</mosaic_0001>

<bundles_post_ra>
// kernel: simple_cnn_forward.2
= control target key start
LH: loop header
LB: loop body
LE: loop exit
PB: predicated region body
PF: predicated region fallthrough
CT: control target
= control target key end

     0   :  { %s942_s24 = smov 0   ;;  %s1045_s0 = inlined_call_operand.vmem [shape: bf16[2,2,32], index: 0, kind: input, shape index: {}]   ;;  %s1046_s1 = inlined_call_operand.vmem [shape: bf16[4,24], index: 1, kind: input, shape index: {}]   ;;  %s1047_s2 = inlined_call_operand.vmem [shape: f32[1,8], index: 2, kind: input, shape index: {}]   ;;  %s1048_s3 = inlined_call_operand.vmem [shape: bf16[8,48], index: 3, kind: input, shape index: {}]   ;;  %s1049_s4 = inlined_call_operand.vmem [shape: f32[1,16], index: 4, kind: input, shape index: {}]   ;;  %s1050_s5 = inlined_call_operand.vmem [shape: bf16[16,96], index: 5, kind: input, shape index: {}]   ;;  %s1051_s6 = inlined_call_operand.vmem [shape: f32[1,32], index: 6, kind: input, shape index: {}]   ;;  %s1052_s7 = inlined_call_operand.vmem [shape: bf16[2,2,32], index: 7, kind: output, shape index: {}]  }
   0x1 LB: > { %s835_s25 = sadd.s32 4294967295, %s889_s24   ;;  %p839_p0 = scmp.ge.s32.totalorder %s889_s24, 1  ;;  %s889_s24 = sphi %s942_s24, %s17_s24  }
   0x2   : > { %p235_p1 = scmp.lt.s32.totalorder %s889_s24, 3 }
   0x4   : > { %p236_p2 = pnand %p839_p0, %p235_p1 }
   0x5   : > { %p263_p3 = scmp.lt.s32.totalorder (!%p236_p2), %s835_s25, 1  ;;  %s891_s29 = smov (!%p236_p2), 124  }
   0x6   : > { %239 = sbr.rel (%p236_p2) target bundleno = 1284 (0x504), region = 48  ;;  %s892_s9 = smov (!%p236_p2), 120  }
   0x7   : > { %s893_s10 = smov (!%p236_p2), 116   ;;  %s894_s11 = smov (!%p236_p2), 112  }
   0x8   : > { %s895_s12 = smov (!%p236_p2), 104   ;;  %s896_s13 = smov (!%p236_p2), 100  }
   0x9   : > { %s897_s14 = smov (!%p236_p2), 108   ;;  %s898_s17 = smov (!%p236_p2), 8  }
   0xa   : > { %s899_s20 = smov (!%p236_p2), 16   ;;  %s900_s27 = smov (!%p236_p2), 32  }
   0xb   : > { %s1054_s25 = smov (!%p263_p3, %s835_s25), 1  ;;  %v271_v2 = vld [vmem:[%s1046_s1] sm:$0x3]  ;;  %vm277_vm0 = vcmask 1041408   ;;  %vm273_vm1 = vcmask 31744   ;;  %vm444_vm2 = vcmask 1040384  }
   0xc   : > { %s265_s28 = scalar_lea.vmem %s1045_s0, %s1054_s25  ;;  %v279_v3 = vsel %vm277_vm0, %v271_v2, 0  ;;  %v880_v12 = vld [vmem:[%s1047_s2] ss:$0 sm:$0xff]  ;;  %vm557_vm3 = vcmask 1043456   ;;  %vm553_vm4 = vcmask 64512   ;;  %vm706_vm5 = vcmask 130048  }
   0xd   : > { %v270_v0 = vld [vmem:[%s265_s28] sm:$0x1]  ;;  %288 = vmatpush.bf16.msra.mxu0 %v279_v3  ;;  %309 = vmatpush.bf16.msra.mxu1 %v279_v3  ;;  %s901_s30 = smov 96   ;;  %vm789_vm6 = vcmask 253952  }
   0xe   : > { %294 = vst [vmem:[#allocation1] ss:$9 sm:$0xff] %v270_v0  ;;  %330 = vmatpush.bf16.msra.mxu2 %v279_v3  ;;  %351 = vmatpush.bf16.msra.mxu3 %v279_v3  ;;  %v547_v52 = vld [vmem:[%s1048_s3] sm:$0xf] }
   0xf   : > { %v559_v53 = vsel %vm557_vm3, %v547_v52, 0 }
  0x10   : > { %840 = vmatmul.msk.bf16.vlgmr.msra.gmra.mxu0 %vm273_vm1, %v270_v0 }
  0x11   : > { %372 = vmatpush.bf16.msrb.mxu0 %v279_v3  ;;  %393 = vmatpush.bf16.msrb.mxu1 %v279_v3 }
  0x12   : > { %435 = vmatpush.bf16.msrb.mxu3 %v279_v3  ;;  %414 = vmatpush.bf16.msrb.mxu2 %v279_v3 }
  0x15   : > { %v295_v1 = vld [vmem:[#allocation1] sm:$0xff]  ;;  %568 = vmatpush.bf16.msra.mxu0 %v559_v53 }
  0x16   : > { %297 = vrot.lane.b32.xlu1 %v295_v1, %s891_s29  ;;  %315 = vst [vmem:[#allocation1] ss:$9 sm:$0xff] %v270_v0 }
  0x1d   : > { %v316_v4 = vld [vmem:[#allocation1] sm:$0xff] }
  0x1e   : > { %318 = vrot.lane.b32.xlu0 %v316_v4, %s892_s9  ;;  %336 = vst [vmem:[#allocation1] ss:$9 sm:$0xff] %v270_v0 }
  0x25   : > { %v337_v5 = vld [vmem:[#allocation1] sm:$0xff] }
  0x26   : > { %339 = vrot.lane.b32.xlu0 %v337_v5, %s893_s10  ;;  %357 = vst [vmem:[#allocation1] ss:$9 sm:$0xff] %v270_v0  ;;  %s268_s10 = scalar_lea.vmem %s1052_s7, %s1054_s25 }
  0x2d   : > { %v358_v6 = vld [vmem:[#allocation1] sm:$0xff] }
  0x2e   : > { %360 = vrot.lane.b32.xlu0 %v358_v6, %s894_s11  ;;  %378 = vst [vmem:[#allocation1] ss:$9 sm:$0xff] %v270_v0 }
  0x35   : > { %v379_v7 = vld [vmem:[#allocation1] sm:$0xff] }
  0x36   : > { %399 = vst [vmem:[#allocation1] ss:$9 sm:$0xff] %v270_v0  ;;  %458 = vrot.lane.b32.xlu0 %v880_v12, %s898_s17 }
  0x3d   : > { %v400_v8 = vld [vmem:[#allocation1] sm:$0xff] }
  0x3e   : > { %402 = vrot.lane.b32.xlu1 %v400_v8, %s895_s12  ;;  %420 = vst [vmem:[#allocation1] ss:$9 sm:$0xff] %v270_v0 }
  0x45   : > { %v421_v9 = vld [vmem:[#allocation1] sm:$0xff] }
  0x46   : > { %423 = vrot.lane.b32.xlu2 %v421_v9, %s896_s13 }
  0x4e   : > { %381 = vrot.lane.b32.xlu2 %v379_v7, %s897_s14 }
  0x88   : > { %v298_v10 = vpop.permute.xlu1 %297 }
  0x89   : > { %841 = vmatmul.msk.bf16.vlgmr.msra.gmra.mxu1 %vm273_vm1, %v298_v10 }
  0x8a   : > { %588 = vmatpush.bf16.msra.mxu1 %v559_v53 }
  0x8d   : > { %v969_v14 = vpop.f32.mrf.mxu0 }
  0x8e   : > { %v529_v15 = vrot.slane %v969_v14, 1  ;;  %464 = vrot.lane.b32.xlu2 %v969_v14, %s898_s17 }
  0x90   : > { %v319_v11 = vpop.permute.xlu0 %318  ;;  %v531_v16 = vsel %vm444_vm2, %v529_v15, 0.0 }
  0x91   : > { %842 = vmatmul.msk.bf16.vlgmr.msra.gmra.mxu2 %vm273_vm1, %v319_v11  ;;  %537 = vrot.lane.b32.xlu0 %v531_v16, %s892_s9 }
  0x92   : > { %608 = vmatpush.bf16.msra.mxu2 %v559_v53 }
  0x95   : > { %v292_v19 = vpop.f32.mrf.mxu0 }
  0x98   : > { %v340_v13 = vpop.permute.xlu0 %339 }
  0x99   : > { %843 = vmatmul.msk.bf16.vlgmr.msra.gmra.mxu3 %vm273_vm1, %v340_v13 }
  0x9a   : > { %628 = vmatpush.bf16.msra.mxu3 %v559_v53  ;;  %v860_v53 = vld [vmem:[%s1050_s5] sm:$0xff] }
  0xa0   : > { %v361_v17 = vpop.permute.xlu0 %360  ;;  %v424_v18 = vpop.permute.xlu2 %423 }
  0xa1   : > { %844 = vmatmul.msk.bf16.vlgmr.msrb.gmra.mxu0 %vm273_vm1, %v361_v17 }
  0xa2   : > { %717 = vmatpush.bf16.msrb.mxu0 %v860_v53 }
  0xa8   : > { %v382_v20 = vpop.permute.xlu2 %381  ;;  %v459_v39 = vpop.permute.xlu0 %458 }
  0xa9   : > { %845 = vmatmul.msk.bf16.vlgmr.msrb.gmra.mxu1 %vm273_vm1, %v382_v20  ;;  %847 = vmatmul.msk.bf16.vlgmr.msrb.gmra.mxu3 %vm273_vm1, %v424_v18 }
  0xaa   : > { %737 = vmatpush.bf16.msrb.mxu1 %v860_v53 }
  0xb0   : > { %v403_v21 = vpop.permute.xlu1 %402 }
  0xb1   : > { %846 = vmatmul.msk.bf16.vlgmr.msrb.gmra.mxu2 %vm273_vm1, %v403_v21 }
  0xe8   : > { %v465_v38 = vpop.permute.xlu2 %464 }
 0x103   : > { %v538_v41 = vpop.permute.xlu0 %537 }
 0x106   : > { %v980_v22 = vpop.f32.mrf.mxu1 }
 0x107   : > { %475 = vrot.lane.b32.xlu0 %v980_v22, %s898_s17  ;;  %452 = vrot.lane.b32.xlu2 %v980_v22, %s892_s9  ;;  %v467_v4 = vadd.f32 %v465_v38, %v980_v22 }
 0x10e   : > { %v313_v23 = vpop.f32.mrf.mxu1 }
 0x114   : > { %v986_v24 = vpop.f32.mrf.mxu2 }
 0x115   : > { %486 = vrot.lane.b32.xlu1 %v986_v24, %s898_s17 }
 0x11c   : > { %v334_v25 = vpop.f32.mrf.mxu2  ;;  %v990_v26 = vpop.f32.mrf.mxu3 }
 0x11d   : > { %497 = vrot.lane.b32.xlu0 %v990_v26, %s898_s17 }
 0x11e   : > { %v374_v27 = vpop.f32.mrf.mxu0 }
 0x11f   : > { %508 = vrot.lane.b32.xlu1 %v374_v27, %s898_s17 }
 0x124   : > { %v355_v28 = vpop.f32.mrf.mxu3 }
 0x125   : > { %469 = vrot.lane.b32.xlu0 %v986_v24, %s892_s9 }
 0x126   : > { %v376_v29 = vpop.f32.mrf.mxu0  ;;  %v395_v30 = vpop.f32.mrf.mxu1 }
 0x127   : > { %519 = vrot.lane.b32.xlu1 %v395_v30, %s898_s17 }
 0x12c   : > { %v437_v31 = vpop.f32.mrf.mxu3 }
 0x12d   : > { %v442_v33 = vrot.slane %v437_v31, 7 }
 0x12e   : > { %v397_v32 = vpop.f32.mrf.mxu1 }
 0x12f   : > { %502 = vrot.lane.b32.xlu1 %v395_v30, %s892_s9  ;;  %v445_v36 = vsel %vm444_vm2, 0.0, %v442_v33 }
 0x134   : > { %v416_v34 = vpop.f32.mrf.mxu2  ;;  %v439_v35 = vpop.f32.mrf.mxu3 }
 0x135   : > { %532 = vrot.lane.b32.xlu2 %v416_v34, %s898_s17 }
 0x137   : > { %447 = vrot.lane.b32.xlu1 %v445_v36, %s898_s17 }
 0x13c   : > { %v418_v37 = vpop.f32.mrf.mxu2 }
 0x13d   : > { %513 = vrot.lane.b32.xlu2 %v416_v34, %s892_s9 }
 0x13f   : > { %480 = vrot.lane.b32.xlu1 %v990_v26, %s892_s9 }
 0x145   : > { %523 = vrot.lane.b32.xlu2 %v437_v31, %s892_s9 }
 0x14d   : > { %491 = vrot.lane.b32.xlu2 %v374_v27, %s892_s9 }
 0x161   : > { %v453_v40 = vpop.permute.xlu2 %452 }
 0x179   : > { %v476_v45 = vpop.permute.xlu0 %475 }
 0x17a   : > { %v478_v21 = vadd.f32 %v476_v45, %v986_v24 }
 0x187   : > { %v487_v42 = vpop.permute.xlu1 %486 }
 0x188   : > { %v489_v16 = vadd.f32 %v487_v42, %v990_v26 }
 0x18f   : > { %v533_v43 = vpop.permute.xlu2 %532  ;;  %v498_v49 = vpop.permute.xlu0 %497 }
 0x190   : > { %v535_v47 = vadd.f32 %v533_v43, %v437_v31  ;;  %v500_v58 = vadd.f32 %v498_v49, %v374_v27 }
 0x191   : > { %v509_v44 = vpop.permute.xlu1 %508 }
 0x192   : > { %v540_v50 = vadd.f32 %v538_v41, %v535_v47  ;;  %v511_v51 = vadd.f32 %v509_v44, %v395_v30 }
 0x194   : > { %v541_v57 = vadd.f32 %v540_v50, %v459_v39 }
 0x196   : > { %v542_v0 = vmax.f32 %v541_v57, 0.0 }
 0x197   : > { %v514_v46 = vpop.permute.xlu2 %513  ;;  %v470_v3 = vpop.permute.xlu0 %469 }
 0x198   : > { %v516_v54 = vadd.f32 %v514_v46, %v511_v51  ;;  %v472_v8 = vadd.f32 %v470_v3, %v467_v4 }
 0x199   : > { %v520_v48 = vpop.permute.xlu1 %519 }
 0x19a   : > { %v522_v55 = vadd.f32 %v520_v48, %v416_v34  ;;  %v517_v61 = vadd.f32 %v516_v54, %v459_v39  ;;  %v473_v17 = vadd.f32 %v472_v8, %v459_v39  ;;  %v881_v48 = vld [vmem:[%s1049_s4] ss:$0 sm:$0xff] }
 0x19c   : > { %v518_v5 = vmax.f32 %v517_v61, 0.0  ;;  %v474_v22 = vmax.f32 %v473_v17, 0.0 }
 0x19f   : > { %v524_v56 = vpop.permute.xlu2 %523 }
 0x1a0   : > { %v526_v59 = vadd.f32 %v524_v56, %v522_v55 }
 0x1a1   : > { %v503_v60 = vpop.permute.xlu1 %502 }
 0x1a2   : > { %v527_v62 = vadd.f32 %v526_v59, %v459_v39  ;;  %v505_v63 = vadd.f32 %v503_v60, %v500_v58 }
 0x1a4   : > { %v528_v1 = vmax.f32 %v527_v62, 0.0  ;;  %v506_v2 = vadd.f32 %v505_v63, %v459_v39 }
 0x1a6   : > { %v507_v6 = vmax.f32 %v506_v2, 0.0  ;;  %v546_v7 = vmax.f32 %v528_v1, %v542_v0 }
 0x1a7   : > { %v492_v15 = vpop.permute.xlu2 %491 }
 0x1a8   : > { %v614_v9 = vpack.c.bf16 %v546_v7, %v546_v7  ;;  %v545_v10 = vmax.f32 %v507_v6, %v518_v5  ;;  %v494_v19 = vadd.f32 %v492_v15, %v489_v16 }
 0x1a9   : > { %v448_v11 = vpop.permute.xlu1 %447 }
 0x1aa   : > { %v450_v12 = vadd.f32 %v448_v11, %v969_v14  ;;  %616 = vrot.lane.b32.xlu0 %v614_v9, %s892_s9  ;;  %v594_v13 = vpack.c.bf16 %v545_v10, %v545_v10  ;;  %v495_v27 = vadd.f32 %v494_v19, %v459_v39 }
 0x1ac   : > { %v455_v18 = vadd.f32 %v453_v40, %v450_v12  ;;  %596 = vrot.lane.b32.xlu1 %v594_v13, %s892_s9  ;;  %v496_v31 = vmax.f32 %v495_v27, 0.0 }
 0x1ae   : > { %v461_v20 = vadd.f32 %v459_v39, %v455_v18 }
 0x1b0   : > { %v462_v23 = vmax.f32 %v461_v20, 0.0  ;;  %v882_v20 = vld [vmem:[%s1051_s6] ss:$0 sm:$0xff] }
 0x1b1   : > { %v481_v25 = vpop.permute.xlu1 %480 }
 0x1b2   : > { %v483_v28 = vadd.f32 %v481_v25, %v478_v21  ;;  %v543_v14 = vmax.f32 %v462_v23, %v474_v22 }
 0x1b4   : > { %v484_v29 = vadd.f32 %v483_v28, %v459_v39  ;;  %v549_v30 = vpack.c.bf16 %v543_v14, %v543_v14 }
 0x1b6   : > { %v485_v32 = vmax.f32 %v484_v29, 0.0  ;;  %551 = vrot.lane.b32.xlu2 %v549_v30, %s892_s9 }
 0x1b8   : > { %v544_v26 = vmax.f32 %v485_v32, %v496_v31 }
 0x1ba   : > { %v574_v33 = vpack.c.bf16 %v544_v26, %v544_v26 }
 0x1bc   : > { %576 = vrot.lane.b32.xlu0 %v574_v33, %s892_s9 }
 0x210   : > { %v552_v34 = vpop.permute.xlu2 %551 }
 0x211   : > { %848 = vmatmul.msk.bf16.vlgmr.msra.gmra.mxu0 %vm553_vm4, %v552_v34 }
 0x21c   : > { %v617_v24 = vpop.permute.xlu0 %616 }
 0x21d   : > { %851 = vmatmul.msk.bf16.vlgmr.msra.gmra.mxu3 %vm553_vm4, %v617_v24 }
 0x21e   : > { %v597_v35 = vpop.permute.xlu1 %596 }
 0x21f   : > { %850 = vmatmul.msk.bf16.vlgmr.msra.gmra.mxu2 %vm553_vm4, %v597_v35 }
 0x22e   : > { %v577_v36 = vpop.permute.xlu0 %576 }
 0x22f   : > { %849 = vmatmul.msk.bf16.vlgmr.msra.gmra.mxu1 %vm553_vm4, %v577_v36 }
 0x28e   : > { %v570_v37 = vpop.f32.mrf.mxu0 }
 0x28f   : > { %v677_v38 = vrot.slane %v570_v37, 1 }
 0x291   : > { %v679_v39 = vsel %vm444_vm2, %v677_v38, 0.0 }
 0x292   : > { %685 = vrot.lane.b32.xlu0 %v679_v39, %s894_s11 }
 0x296   : > { %v572_v40 = vpop.f32.mrf.mxu0 }
 0x2a0   : > { %v630_v41 = vpop.f32.mrf.mxu3 }
 0x2a1   : > { %v635_v42 = vrot.slane %v630_v41, 7 }
 0x2a2   : > { %v610_v43 = vpop.f32.mrf.mxu2 }
 0x2a3   : > { %680 = vrot.lane.b32.xlu2 %v610_v43, %s899_s20  ;;  %v637_v44 = vsel %vm444_vm2, 0.0, %v635_v42 }
 0x2a4   : > { %639 = vrot.lane.b32.xlu0 %v637_v44, %s899_s20 }
 0x2a8   : > { %v632_v45 = vpop.f32.mrf.mxu3 }
 0x2aa   : > { %v612_v46 = vpop.f32.mrf.mxu2 }
 0x2ab   : > { %671 = vrot.lane.b32.xlu2 %v630_v41, %s894_s11 }
 0x2ac   : > { %v590_v47 = vpop.f32.mrf.mxu1  ;;  %661 = vrot.lane.b32.xlu0 %v610_v43, %s894_s11 }
 0x2ad   : > { %667 = vrot.lane.b32.xlu1 %v590_v47, %s899_s20 }
 0x2b3   : > { %650 = vrot.lane.b32.xlu2 %v881_v48, %s899_s20 }
 0x2b4   : > { %v592_v49 = vpop.f32.mrf.mxu1 }
 0x2b5   : > { %656 = vrot.lane.b32.xlu1 %v570_v37, %s899_s20 }
 0x2bd   : > { %644 = vrot.lane.b32.xlu1 %v590_v47, %s894_s11 }
 0x2fd   : > { %v681_v50 = vpop.permute.xlu2 %680 }
 0x2fe   : > { %v683_v54 = vadd.f32 %v681_v50, %v630_v41 }
 0x304   : > { %v686_v52 = vpop.permute.xlu0 %685 }
 0x305   : > { %v672_v51 = vpop.permute.xlu2 %671  ;;  %v688_v57 = vadd.f32 %v686_v52, %v683_v54 }
 0x30d   : > { %v651_v55 = vpop.permute.xlu2 %650 }
 0x30e   : > { %v689_v60 = vadd.f32 %v688_v57, %v651_v55 }
 0x310   : > { %v690_v63 = vmax.f32 %v689_v60, 0.0 }
 0x316   : > { %v640_v59 = vpop.permute.xlu0 %639 }
 0x317   : > { %v642_v7 = vadd.f32 %v640_v59, %v570_v37 }
 0x31e   : > { %v662_v5 = vpop.permute.xlu0 %661 }
 0x31f   : > { %v668_v56 = vpop.permute.xlu1 %667 }
 0x320   : > { %v670_v58 = vadd.f32 %v668_v56, %v610_v43 }
 0x322   : > { %v674_v61 = vadd.f32 %v672_v51, %v670_v58 }
 0x324   : > { %v675_v62 = vadd.f32 %v674_v61, %v651_v55 }
 0x326   : > { %v676_v0 = vmax.f32 %v675_v62, 0.0 }
 0x327   : > { %v657_v1 = vpop.permute.xlu1 %656 }
 0x328   : > { %v659_v2 = vadd.f32 %v657_v1, %v590_v47  ;;  %v692_v3 = vmax.f32 %v676_v0, %v690_v63 }
 0x32a   : > { %v723_v4 = vpack.c.bf16 %v692_v3, %v692_v3  ;;  %v664_v6 = vadd.f32 %v662_v5, %v659_v2 }
 0x32c   : > { %725 = vrot.lane.b32.xlu1 %v723_v4, %s894_s11  ;;  %v665_v9 = vadd.f32 %v664_v6, %v651_v55 }
 0x32e   : > { %v666_v12 = vmax.f32 %v665_v9, 0.0 }
 0x32f   : > { %v645_v8 = vpop.permute.xlu1 %644 }
 0x330   : > { %v647_v10 = vadd.f32 %v645_v8, %v642_v7 }
 0x332   : > { %v653_v11 = vadd.f32 %v651_v55, %v647_v10 }
 0x334   : > { %v654_v13 = vmax.f32 %v653_v11, 0.0 }
 0x336   : > { %v691_v15 = vmax.f32 %v654_v13, %v666_v12 }
 0x338   : > { %v696_v16 = vpack.c.bf16 %v691_v15, %v691_v15 }
 0x33a   : > { %698 = vrot.lane.b32.xlu2 %v696_v16, %s894_s11 }
 0x394   : > { %v699_v17 = vpop.permute.xlu2 %698 }
 0x395   : > { %856 = vmatmul.msk.bf16.vlgmr.msrb.gmra.mxu0 %vm706_vm5, %v699_v17 }
 0x39e   : > { %v726_v18 = vpop.permute.xlu1 %725 }
 0x39f   : > { %857 = vmatmul.msk.bf16.vlgmr.msrb.gmra.mxu1 %vm706_vm5, %v726_v18 }
 0x412   : > { %v719_v19 = vpop.f32.mrf.mxu0 }
 0x413   : > { %767 = vrot.lane.b32.xlu1 %v719_v19, %s900_s27  ;;  %v764_v27 = vrot.slane %v719_v19, 1 }
 0x415   : > { %v766_v14 = vsel %vm444_vm2, %v764_v27, 0.0 }
 0x41a   : > { %v721_v21 = vpop.f32.mrf.mxu0 }
 0x41b   : > { %758 = vrot.lane.b32.xlu1 %v882_v20, %s900_s27 }
 0x41c   : > { %v739_v22 = vpop.f32.mrf.mxu1 }
 0x41d   : > { %v744_v23 = vrot.slane %v739_v22, 7  ;;  %752 = vrot.lane.b32.xlu2 %v739_v22, %s901_s30 }
 0x41f   : > { %v746_v25 = vsel %vm444_vm2, 0.0, %v744_v23 }
 0x420   : > { %748 = vrot.lane.b32.xlu0 %v746_v25, %s900_s27 }
 0x424   : > { %v741_v28 = vpop.f32.mrf.mxu1 }
 0x428   : > { %772 = vrot.lane.b32.xlu0 %v766_v14, %s901_s30 }
 0x477   : > { %v753_v32 = vpop.permute.xlu2 %752 }
 0x485   : > { %v768_v29 = vpop.permute.xlu1 %767 }
 0x486   : > { %v770_v34 = vadd.f32 %v768_v29, %v739_v22 }
 0x48d   : > { %v759_v33 = vpop.permute.xlu1 %758 }
 0x492   : > { %v749_v30 = vpop.permute.xlu0 %748 }
 0x493   : > { %v751_v31 = vadd.f32 %v749_v30, %v719_v19 }
 0x495   : > { %v755_v26 = vadd.f32 %v753_v32, %v751_v31 }
 0x497   : > { %v761_v35 = vadd.f32 %v759_v33, %v755_v26 }
 0x499   : > { %v762_v38 = vmax.f32 %v761_v35, 0.0 }
 0x49a   : > { %v773_v24 = vpop.permute.xlu0 %772 }
 0x49b   : > { %v775_v36 = vadd.f32 %v773_v24, %v770_v34 }
 0x49d   : > { %v776_v37 = vadd.f32 %v775_v36, %v759_v33 }
 0x49f   : > { %v777_v39 = vmax.f32 %v776_v37, 0.0 }
 0x4a1   : > { %v778_v40 = vmax.f32 %v762_v38, %v777_v39 }
 0x4a3   : > { %v779_v41 = vpack.c.bf16 %v778_v40, %v778_v40 }
 0x4a5   : > { %v781_v42 = vrot.slane %v779_v41, 3 }
 0x4a7   : > { %v784_v43 = vsel %vm444_vm2, %v779_v41, %v781_v42 }
 0x4a8   : > { %786 = vrot.lane.b32.xlu2 %v784_v43, %s901_s30 }
 0x502   : > { %v787_v44 = vpop.permute.xlu2 %786 }
 0x503   : > { %790 = vst.msk [vmem:[%s268_s10] sm:$0x1] %vm789_vm6, %v787_v44 }
 0x504 PF: > { %s17_s24 = sadd.s32 1, %s889_s24  }
 0x505   : > { %p14_p4 = scmp.ge.s32.totalorder %s17_s24, 4  }
 0x507   :  { %16 = sbr.rel (!%p14_p4) target bundleno = 1 (0x1), region = 78 }

// kernel: simple_cnn_forward.3
= control target key start
LH: loop header
LB: loop body
LE: loop exit
PB: predicated region body
PF: predicated region fallthrough
CT: control target
= control target key end

     0   :  { %vm223_vm0 = vcmask 523264   ;;  %s2041_s0 = inlined_call_operand.vmem [shape: bf16[2,64], index: 0, kind: input, shape index: {}]   ;;  %s2042_s1 = inlined_call_operand.vmem [shape: bf16[64,1024], index: 1, kind: input, shape index: {}]   ;;  %s2043_s2 = inlined_call_operand.vmem [shape: f32[1,1024], index: 2, kind: input, shape index: {}]   ;;  %s2044_s3 = inlined_call_operand.vmem [shape: bf16[1024,10], index: 3, kind: input, shape index: {}]   ;;  %s2045_s4 = inlined_call_operand.vmem [shape: f32[1,10], index: 4, kind: input, shape index: {}]   ;;  %s2046_s5 = inlined_call_operand.hbm [shape: f32[2,10], index: 5, kind: output, shape index: {}]  }
   0x1   :  { %v1156_v0 = vld [vmem:[%s2042_s1 + $0xc0] sm:$0xf]  ;;  %v1474_v2 = vld [vmem:[%s2042_s1 + $0xc4] sm:$0xf]  ;;  %v1164_v5 = vld [vmem:[%s2042_s1 + $0xc8] sm:$0xf] }
   0x2   :  { %v1478_v1 = vld [vmem:[%s2042_s1 + $0xdc] sm:$0xf0]  ;;  %v1158_v4 = vld [vmem:[%s2042_s1 + $0xe0] sm:$0xf0]  ;;  %v1479_v6 = vld [vmem:[%s2042_s1 + $0xe4] sm:$0xf0] }
   0x3   :  { %v1157_v3 = vor.u32 %v1478_v1, %v1156_v0  ;;  %v1161_v7 = vor.u32 %v1474_v2, %v1158_v4  ;;  %v1165_v8 = vor.u32 %v1479_v6, %v1164_v5  ;;  %v1475_v9 = vld [vmem:[%s2042_s1 + $0xcc] sm:$0xf]  ;;  %v1124_v11 = vld [vmem:[%s2042_s1 + $0x80] sm:$0xf]  ;;  %v1466_v14 = vld [vmem:[%s2042_s1 + $0x84] sm:$0xf] }
   0x4   :  { %v1166_v10 = vld [vmem:[%s2042_s1 + $0xe8] sm:$0xf0]  ;;  %v1470_v13 = vld [vmem:[%s2042_s1 + $0x9c] sm:$0xf0]  ;;  %v1126_v15 = vld [vmem:[%s2042_s1 + $0xa0] sm:$0xf0] }
   0x5   :  { %231 = vmatpush.bf16.msra.mxu0 %v1157_v3  ;;  %v1169_v12 = vor.u32 %v1475_v9, %v1166_v10  ;;  %244 = vmatpush.bf16.msra.mxu1 %v1161_v7  ;;  %v1125_v16 = vor.u32 %v1470_v13, %v1124_v11  ;;  %v1129_v17 = vor.u32 %v1466_v14, %v1126_v15  ;;  %v1132_v18 = vld [vmem:[%s2042_s1 + $0x88] sm:$0xf]  ;;  %v1467_v20 = vld [vmem:[%s2042_s1 + $0x8c] sm:$0xf]  ;;  %v1092_v23 = vld [vmem:[%s2042_s1 + $0x40] sm:$0xf] }
   0x6   :  { %257 = vmatpush.bf16.msra.mxu2 %v1165_v8  ;;  %v1471_v19 = vld [vmem:[%s2042_s1 + $0xa4] sm:$0xf0]  ;;  %v1134_v22 = vld [vmem:[%s2042_s1 + $0xa8] sm:$0xf0]  ;;  %v1462_v24 = vld [vmem:[%s2042_s1 + $0x5c] sm:$0xf0] }
   0x7   :  { %270 = vmatpush.bf16.msra.mxu3 %v1169_v12  ;;  %v1133_v21 = vor.u32 %v1471_v19, %v1132_v18  ;;  %v1137_v25 = vor.u32 %v1467_v20, %v1134_v22  ;;  %v1458_v26 = vld [vmem:[%s2042_s1 + $0x44] sm:$0xf]  ;;  %v1100_v28 = vld [vmem:[%s2042_s1 + $0x48] sm:$0xf]  ;;  %v1093_v29 = vor.u32 %v1462_v24, %v1092_v23  ;;  %v1459_v31 = vld [vmem:[%s2042_s1 + $0x4c] sm:$0xf] }
   0x8   :  { %v1094_v27 = vld [vmem:[%s2042_s1 + $0x60] sm:$0xf0]  ;;  %v1463_v30 = vld [vmem:[%s2042_s1 + $0x64] sm:$0xf0]  ;;  %v1102_v32 = vld [vmem:[%s2042_s1 + $0x68] sm:$0xf0] }
   0x9   :  { %232 = vmatpush.bf16.msra.mxu0 %v1125_v16  ;;  %245 = vmatpush.bf16.msra.mxu1 %v1129_v17  ;;  %v1097_v33 = vor.u32 %v1458_v26, %v1094_v27  ;;  %v1101_v34 = vor.u32 %v1463_v30, %v1100_v28  ;;  %v1060_v35 = vld [vmem:[%s2042_s1] sm:$0xf]  ;;  %v1450_v37 = vld [vmem:[%s2042_s1 + $0x4] sm:$0xf]  ;;  %v1105_v38 = vor.u32 %v1459_v31, %v1102_v32  ;;  %v1068_v40 = vld [vmem:[%s2042_s1 + $0x8] sm:$0xf] }
   0xa   :  { %258 = vmatpush.bf16.msra.mxu2 %v1133_v21  ;;  %v1454_v36 = vld [vmem:[%s2042_s1 + $0x1c] sm:$0xf0]  ;;  %v1062_v39 = vld [vmem:[%s2042_s1 + $0x20] sm:$0xf0]  ;;  %v1455_v41 = vld [vmem:[%s2042_s1 + $0x24] sm:$0xf0] }
   0xb   :  { %271 = vmatpush.bf16.msra.mxu3 %v1137_v25  ;;  %v1451_v42 = vld [vmem:[%s2042_s1 + $0xc] sm:$0xf]  ;;  %v1061_v44 = vor.u32 %v1454_v36, %v1060_v35  ;;  %v1180_v45 = vld [vmem:[%s2042_s1 + $0xd8] sm:$0xf]  ;;  %v1065_v47 = vor.u32 %v1450_v37, %v1062_v39  ;;  %v1069_v48 = vor.u32 %v1455_v41, %v1068_v40  ;;  %v1477_v49 = vld [vmem:[%s2042_s1 + $0xdc] sm:$0xf] }
   0xc   :  { %v1070_v43 = vld [vmem:[%s2042_s1 + $0x28] sm:$0xf0]  ;;  %v1481_v46 = vld [vmem:[%s2042_s1 + $0xf4] sm:$0xf0]  ;;  %v1182_v50 = vld [vmem:[%s2042_s1 + $0xf8] sm:$0xf0] }
   0xd   :  { %233 = vmatpush.bf16.msra.mxu0 %v1093_v29  ;;  %246 = vmatpush.bf16.msra.mxu1 %v1097_v33  ;;  %v1073_v51 = vor.u32 %v1451_v42, %v1070_v43  ;;  %v1716_v52 = vld [vmem:[%s2041_s0] sm:$0x1]  ;;  %v1181_v53 = vor.u32 %v1481_v46, %v1180_v45  ;;  %v1172_v54 = vld [vmem:[%s2042_s1 + $0xd0] sm:$0xf]  ;;  %v1476_v56 = vld [vmem:[%s2042_s1 + $0xd4] sm:$0xf]  ;;  %v1185_v57 = vor.u32 %v1477_v49, %v1182_v50 }
   0xe   :  { %259 = vmatpush.bf16.msra.mxu2 %v1101_v34  ;;  %v1480_v55 = vld [vmem:[%s2042_s1 + $0xec] sm:$0xf0]  ;;  %v1174_v58 = vld [vmem:[%s2042_s1 + $0xf0] sm:$0xf0]  ;;  %v1148_v59 = vld [vmem:[%s2042_s1 + $0x98] sm:$0xf] }
   0xf   :  { %272 = vmatpush.bf16.msra.mxu3 %v1105_v38  ;;  %v1473_v60 = vld [vmem:[%s2042_s1 + $0xb4] sm:$0xf0]  ;;  %v1469_v61 = vld [vmem:[%s2042_s1 + $0x9c] sm:$0xf]  ;;  %v1173_v63 = vor.u32 %v1480_v55, %v1172_v54  ;;  %v1177_v0 = vor.u32 %v1476_v56, %v1174_v58  ;;  %v1140_v2 = vld [vmem:[%s2042_s1 + $0x90] sm:$0xf] }
  0x10   :  { %v1150_v62 = vld [vmem:[%s2042_s1 + $0xb8] sm:$0xf0]  ;;  %v1149_v1 = vor.u32 %v1473_v60, %v1148_v59  ;;  %v1472_v3 = vld [vmem:[%s2042_s1 + $0xac] sm:$0xf0]  ;;  %v1468_v4 = vld [vmem:[%s2042_s1 + $0x94] sm:$0xf] }
  0x11   :  { %234 = vmatpush.bf16.msra.mxu0 %v1061_v44  ;;  %247 = vmatpush.bf16.msra.mxu1 %v1065_v47  ;;  %v1153_v5 = vor.u32 %v1469_v61, %v1150_v62  ;;  %v1142_v6 = vld [vmem:[%s2042_s1 + $0xb0] sm:$0xf0]  ;;  %v1116_v7 = vld [vmem:[%s2042_s1 + $0x58] sm:$0xf]  ;;  %v1461_v9 = vld [vmem:[%s2042_s1 + $0x5c] sm:$0xf]  ;;  %v1141_v11 = vor.u32 %v1472_v3, %v1140_v2 }
  0x12   :  { %260 = vmatpush.bf16.msra.mxu2 %v1069_v48  ;;  %v1465_v8 = vld [vmem:[%s2042_s1 + $0x74] sm:$0xf0]  ;;  %v1118_v10 = vld [vmem:[%s2042_s1 + $0x78] sm:$0xf0]  ;;  %v1145_v12 = vor.u32 %v1468_v4, %v1142_v6  ;;  %v1108_v14 = vld [vmem:[%s2042_s1 + $0x50] sm:$0xf] }
  0x13   :  { %273 = vmatpush.bf16.msra.mxu3 %v1073_v51  ;;  %v1117_v13 = vor.u32 %v1465_v8, %v1116_v7  ;;  %v1464_v15 = vld [vmem:[%s2042_s1 + $0x6c] sm:$0xf0]  ;;  %v1460_v16 = vld [vmem:[%s2042_s1 + $0x54] sm:$0xf]  ;;  %v1121_v17 = vor.u32 %v1461_v9, %v1118_v10  ;;  %v1084_v19 = vld [vmem:[%s2042_s1 + $0x18] sm:$0xf] }
  0x14   :  { %1186 = vmatmul.msk.bf16.vlgmr.msra.gmra.mxu0 %vm223_vm0, %v1716_v52  ;;  %1187 = vmatmul.msk.bf16.vlgmr.msra.gmra.mxu1 %vm223_vm0, %v1716_v52  ;;  %v1110_v18 = vld [vmem:[%s2042_s1 + $0x70] sm:$0xf0]  ;;  %v1457_v20 = vld [vmem:[%s2042_s1 + $0x34] sm:$0xf0]  ;;  %v1453_v21 = vld [vmem:[%s2042_s1 + $0x1c] sm:$0xf]  ;;  %v1109_v23 = vor.u32 %v1464_v15, %v1108_v14 }
  0x15   :  { %1188 = vmatmul.msk.bf16.vlgmr.msra.gmra.mxu2 %vm223_vm0, %v1716_v52  ;;  %283 = vmatpush.bf16.msrb.mxu0 %v1173_v63  ;;  %v1086_v22 = vld [vmem:[%s2042_s1 + $0x38] sm:$0xf0]  ;;  %v1113_v24 = vor.u32 %v1460_v16, %v1110_v18  ;;  %v1085_v25 = vor.u32 %v1457_v20, %v1084_v19  ;;  %v1076_v26 = vld [vmem:[%s2042_s1 + $0x10] sm:$0xf]  ;;  %v1452_v29 = vld [vmem:[%s2042_s1 + $0x14] sm:$0xf] }
  0x16   :  { %309 = vmatpush.bf16.msrb.mxu2 %v1181_v53  ;;  %1189 = vmatmul.msk.bf16.vlgmr.msra.gmra.mxu3 %vm223_vm0, %v1716_v52  ;;  %v1456_v27 = vld [vmem:[%s2042_s1 + $0x2c] sm:$0xf0]  ;;  %v1089_v28 = vor.u32 %v1453_v21, %v1086_v22  ;;  %v1078_v30 = vld [vmem:[%s2042_s1 + $0x30] sm:$0xf0]  ;;  %v1505_v31 = vld [vmem:[%s2044_s3 + $0xb8] sm:$0xff] }
  0x17   :  { %322 = vmatpush.bf16.msrb.mxu3 %v1185_v57  ;;  %296 = vmatpush.bf16.msrb.mxu1 %v1177_v0  ;;  %v1513_v32 = vld [vmem:[%s2044_s3 + $0xf8] sm:$0xff]  ;;  %v1077_v33 = vor.u32 %v1456_v27, %v1076_v26  ;;  %v1081_v34 = vor.u32 %v1452_v29, %v1078_v30  ;;  %v1504_v37 = vld [vmem:[%s2044_s3 + $0xb0] sm:$0xff] }
  0x18   :  { %v1489_v35 = vld [vmem:[%s2044_s3 + $0x38] sm:$0xff] }
  0x19   :  { %284 = vmatpush.bf16.msrb.mxu0 %v1141_v11  ;;  %v1497_v36 = vld [vmem:[%s2044_s3 + $0x78] sm:$0xff] }
  0x1a   :  { %310 = vmatpush.bf16.msrb.mxu2 %v1149_v1 }
  0x1b   :  { %323 = vmatpush.bf16.msrb.mxu3 %v1153_v5  ;;  %297 = vmatpush.bf16.msrb.mxu1 %v1145_v12 }
  0x1d   :  { %285 = vmatpush.bf16.msrb.mxu0 %v1109_v23 }
  0x1e   :  { %311 = vmatpush.bf16.msrb.mxu2 %v1117_v13 }
  0x1f   :  { %324 = vmatpush.bf16.msrb.mxu3 %v1121_v17  ;;  %298 = vmatpush.bf16.msrb.mxu1 %v1113_v24 }
  0x22   :  { %312 = vmatpush.bf16.msrb.mxu2 %v1085_v25 }
  0x23   :  { %325 = vmatpush.bf16.msrb.mxu3 %v1089_v28 }
  0x26   :  { %962 = vmatpush.bf16.msra.mxu2 %v1505_v31 }
  0x27   :  { %10 = vsyncpa [#allocation4], 0  ;;  %975 = vmatpush.bf16.msra.mxu3 %v1513_v32  ;;  %286 = vmatpush.bf16.msrb.mxu0 %v1077_v33  ;;  %v1488_v38 = vld [vmem:[%s2044_s3 + $0x30] sm:$0xff]  ;;  %v1503_v41 = vld [vmem:[%s2044_s3 + $0xa8] sm:$0xff]  ;;  %vm345_vm1 = vcmask 1041408   ;;  %vm347_vm2 = vcmask 1045508  }
  0x28   :  { %299 = vmatpush.bf16.msrb.mxu1 %v1081_v34  ;;  %v1512_v39 = vld [vmem:[%s2044_s3 + $0xf0] sm:$0xff]  ;;  %1192 = vmatmul.msk.bf16.vlgmr.msrb.gmra.mxu2 %vm223_vm0, %v1716_v52  ;;  %v1487_v42 = vld [vmem:[%s2044_s3 + $0x28] sm:$0xff]  ;;  %v1502_v45 = vld [vmem:[%s2044_s3 + $0xa0] sm:$0xff]  ;;  %vm349_vm3 = vcmask 1043456   ;;  %s1574_s16 = smov [#allocation3]   ;;  %s1049_s19 = sshll.u32 %s2046_s5, 4  ;;  %s1050_s19 = int_to_ptr.hbm [resolvable:$true] %s1049_s19 }
  0x29   :  { %v1496_v40 = vld [vmem:[%s2044_s3 + $0x70] sm:$0xff]  ;;  %1193 = vmatmul.msk.bf16.vlgmr.msrb.gmra.mxu3 %vm223_vm0, %v1716_v52  ;;  %v1511_v43 = vld [vmem:[%s2044_s3 + $0xe8] sm:$0xff]  ;;  %v1486_v46 = vld [vmem:[%s2044_s3 + $0x20] sm:$0xff]  ;;  %s1047_s17 = sshll.u32 %s1574_s16, 4  ;;  %vm1040_vm4 = vcmask 74752   ;;  %s1048_s17 = int_to_ptr.vmem [resolvable:$true] %s1047_s17 }
  0x2a   :  { %963 = vmatpush.bf16.msra.mxu2 %v1504_v37  ;;  %1190 = vmatmul.msk.bf16.vlgmr.msrb.gmra.mxu0 %vm223_vm0, %v1716_v52  ;;  %v1495_v44 = vld [vmem:[%s2044_s3 + $0x68] sm:$0xff]  ;;  %v1510_v47 = vld [vmem:[%s2044_s3 + $0xe0] sm:$0xff]  ;;  %v1501_v49 = vld [vmem:[%s2044_s3 + $0x98] sm:$0xff] }
  0x2b   :  { %936 = vmatpush.bf16.msra.mxu0 %v1489_v35  ;;  %1191 = vmatmul.msk.bf16.vlgmr.msrb.gmra.mxu1 %vm223_vm0, %v1716_v52  ;;  %v1494_v48 = vld [vmem:[%s2044_s3 + $0x60] sm:$0xff]  ;;  %v1485_v50 = vld [vmem:[%s2044_s3 + $0x18] sm:$0xff]  ;;  %v1500_v53 = vld [vmem:[%s2044_s3 + $0x90] sm:$0xff] }
  0x2c   :  { %949 = vmatpush.bf16.msra.mxu1 %v1497_v36  ;;  %976 = vmatpush.bf16.msra.mxu3 %v1512_v39  ;;  %v1509_v51 = vld [vmem:[%s2044_s3 + $0xd8] sm:$0xff]  ;;  %v1484_v54 = vld [vmem:[%s2044_s3 + $0x10] sm:$0xff]  ;;  %v1483_v57 = vld [vmem:[%s2044_s3 + $0x8] sm:$0xff] }
  0x2d   :  { %v1493_v52 = vld [vmem:[%s2044_s3 + $0x58] sm:$0xff]  ;;  %v1508_v55 = vld [vmem:[%s2044_s3 + $0xd0] sm:$0xff]  ;;  %v1491_v58 = vld [vmem:[%s2044_s3 + $0x48] sm:$0xff] }
  0x2e   :  { %964 = vmatpush.bf16.msra.mxu2 %v1503_v41  ;;  %v1492_v56 = vld [vmem:[%s2044_s3 + $0x50] sm:$0xff]  ;;  %v1499_v59 = vld [vmem:[%s2044_s3 + $0x88] sm:$0xff]  ;;  %v1482_v61 = vld [vmem:[%s2044_s3] sm:$0xff] }
  0x2f   :  { %937 = vmatpush.bf16.msra.mxu0 %v1488_v38  ;;  %v1507_v60 = vld [vmem:[%s2044_s3 + $0xc8] sm:$0xff]  ;;  %v1490_v62 = vld [vmem:[%s2044_s3 + $0x40] sm:$0xff]  ;;  %v1521_v1 = vld [vmem:[%s2044_s3 + $0x138] sm:$0xff] }
  0x30   :  { %950 = vmatpush.bf16.msra.mxu1 %v1496_v40  ;;  %977 = vmatpush.bf16.msra.mxu3 %v1511_v43  ;;  %v1498_v63 = vld [vmem:[%s2044_s3 + $0x80] sm:$0xff]  ;;  %v1529_v2 = vld [vmem:[%s2044_s3 + $0x178] sm:$0xff]  ;;  %v1520_v5 = vld [vmem:[%s2044_s3 + $0x130] sm:$0xff] }
  0x31   :  { %v1506_v0 = vld [vmem:[%s2044_s3 + $0xc0] sm:$0xff]  ;;  %v1537_v3 = vld [vmem:[%s2044_s3 + $0x1b8] sm:$0xff]  ;;  %v1528_v6 = vld [vmem:[%s2044_s3 + $0x170] sm:$0xff] }
  0x32   :  { %965 = vmatpush.bf16.msra.mxu2 %v1502_v45  ;;  %v1545_v4 = vld [vmem:[%s2044_s3 + $0x1f8] sm:$0xff]  ;;  %v1536_v7 = vld [vmem:[%s2044_s3 + $0x1b0] sm:$0xff]  ;;  %v1519_v9 = vld [vmem:[%s2044_s3 + $0x128] sm:$0xff] }
  0x33   :  { %938 = vmatpush.bf16.msra.mxu0 %v1487_v42  ;;  %v1544_v8 = vld [vmem:[%s2044_s3 + $0x1f0] sm:$0xff]  ;;  %v1527_v10 = vld [vmem:[%s2044_s3 + $0x168] sm:$0xff]  ;;  %v1518_v13 = vld [vmem:[%s2044_s3 + $0x120] sm:$0xff] }
  0x34   :  { %951 = vmatpush.bf16.msra.mxu1 %v1495_v44  ;;  %978 = vmatpush.bf16.msra.mxu3 %v1510_v47  ;;  %v1535_v11 = vld [vmem:[%s2044_s3 + $0x1a8] sm:$0xff]  ;;  %v1526_v14 = vld [vmem:[%s2044_s3 + $0x160] sm:$0xff]  ;;  %v1517_v17 = vld [vmem:[%s2044_s3 + $0x118] sm:$0xff] }
  0x35   :  { %v1543_v12 = vld [vmem:[%s2044_s3 + $0x1e8] sm:$0xff]  ;;  %v1534_v15 = vld [vmem:[%s2044_s3 + $0x1a0] sm:$0xff]  ;;  %v1525_v18 = vld [vmem:[%s2044_s3 + $0x158] sm:$0xff] }
  0x36   :  { %966 = vmatpush.bf16.msra.mxu2 %v1501_v49  ;;  %v1542_v16 = vld [vmem:[%s2044_s3 + $0x1e0] sm:$0xff]  ;;  %v1533_v19 = vld [vmem:[%s2044_s3 + $0x198] sm:$0xff]  ;;  %v1516_v22 = vld [vmem:[%s2044_s3 + $0x110] sm:$0xff] }
  0x37   :  { %939 = vmatpush.bf16.msra.mxu0 %v1486_v46  ;;  %v1541_v20 = vld [vmem:[%s2044_s3 + $0x1d8] sm:$0xff]  ;;  %v1977_v21 = vld [vmem:[%s2043_s2] sm:$0xff]  ;;  %v1524_v23 = vld [vmem:[%s2044_s3 + $0x150] sm:$0xff] }
  0x38   :  { %952 = vmatpush.bf16.msra.mxu1 %v1494_v48  ;;  %979 = vmatpush.bf16.msra.mxu3 %v1509_v51  ;;  %v1532_v24 = vld [vmem:[%s2044_s3 + $0x190] sm:$0xff]  ;;  %v368_v26 = vperm.slane %v1977_v21, 1  ;;  %v369_v27 = vperm.slane %v1977_v21, 2  ;;  %v370_v28 = vperm.slane %v1977_v21, 3  ;;  %v1515_v30 = vld [vmem:[%s2044_s3 + $0x108] sm:$0xff]  ;;  %v367_v35 = vperm.slane %v1977_v21, 0 }
  0x39   :  { %v1540_v25 = vld [vmem:[%s2044_s3 + $0x1d0] sm:$0xff]  ;;  %v1523_v31 = vld [vmem:[%s2044_s3 + $0x148] sm:$0xff]  ;;  %v1514_v39 = vld [vmem:[%s2044_s3 + $0x100] sm:$0xff] }
  0x3a   :  { %967 = vmatpush.bf16.msra.mxu2 %v1500_v53  ;;  %v1531_v32 = vld [vmem:[%s2044_s3 + $0x188] sm:$0xff]  ;;  %v375_v36 = vrot.slane %v368_v26, 6  ;;  %v376_v37 = vrot.slane %v369_v27, 4  ;;  %v377_v38 = vrot.slane %v370_v28, 2  ;;  %v1522_v40 = vld [vmem:[%s2044_s3 + $0x140] sm:$0xff] }
  0x3b   :  { %940 = vmatpush.bf16.msra.mxu0 %v1485_v50  ;;  %v1539_v34 = vld [vmem:[%s2044_s3 + $0x1c8] sm:$0xff]  ;;  %v1530_v41 = vld [vmem:[%s2044_s3 + $0x180] sm:$0xff] }
  0x3c   :  { %953 = vmatpush.bf16.msra.mxu1 %v1493_v52  ;;  %980 = vmatpush.bf16.msra.mxu3 %v1508_v55  ;;  %v1538_v42 = vld [vmem:[%s2044_s3 + $0x1c0] sm:$0xff]  ;;  %v381_v45 = vsel %vm345_vm1, %v367_v35, %v375_v36  ;;  %v382_v46 = vsel %vm347_vm2, %v376_v37, %v377_v38 }
  0x3d   :  { %v383_v53 = vsel %vm349_vm3, %v381_v45, %v382_v46  ;;  %v1547_v38 = vld [vmem:[%s2045_s4] ss:$0 sm:$0xff] }
  0x3e   :  { %968 = vmatpush.bf16.msra.mxu2 %v1499_v59  ;;  %v373_v59 = vperm.slane %v1977_v21, 6 }
  0x3f   :  { %941 = vmatpush.bf16.msra.mxu0 %v1484_v54 }
  0x40   :  { %954 = vmatpush.bf16.msra.mxu1 %v1492_v56  ;;  %981 = vmatpush.bf16.msra.mxu3 %v1507_v60  ;;  %v374_v60 = vperm.slane %v1977_v21, 7 }
  0x42   :  { %969 = vmatpush.bf16.msra.mxu2 %v1498_v63 }
  0x43   :  { %942 = vmatpush.bf16.msra.mxu0 %v1483_v57 }
  0x44   :  { %955 = vmatpush.bf16.msra.mxu1 %v1491_v58  ;;  %982 = vmatpush.bf16.msra.mxu3 %v1506_v0  ;;  %v372_v58 = vperm.slane %v1977_v21, 5  ;;  %v371_v0 = vperm.slane %v1977_v21, 4 }
  0x46   :  { %1014 = vmatpush.bf16.msrb.mxu2 %v1537_v3  ;;  %v380_v3 = vrot.slane %v374_v60, 2 }
  0x47   :  { %943 = vmatpush.bf16.msra.mxu0 %v1482_v61 }
  0x48   :  { %956 = vmatpush.bf16.msra.mxu1 %v1490_v62  ;;  %1027 = vmatpush.bf16.msrb.mxu3 %v1545_v4 }
  0x4a   :  { %1015 = vmatpush.bf16.msrb.mxu2 %v1536_v7 }
  0x4b   :  { %988 = vmatpush.bf16.msrb.mxu0 %v1521_v1  ;;  %v378_v1 = vrot.slane %v372_v58, 6 }
  0x4c   :  { %1001 = vmatpush.bf16.msrb.mxu1 %v1529_v2  ;;  %1028 = vmatpush.bf16.msrb.mxu3 %v1544_v8  ;;  %v379_v2 = vrot.slane %v373_v59, 4 }
  0x4d   :  { %v384_v8 = vsel %vm345_vm1, %v371_v0, %v378_v1 }
  0x4e   :  { %1016 = vmatpush.bf16.msrb.mxu2 %v1535_v11 }
  0x4f   :  { %989 = vmatpush.bf16.msrb.mxu0 %v1520_v5 }
  0x50   :  { %1002 = vmatpush.bf16.msrb.mxu1 %v1528_v6  ;;  %1029 = vmatpush.bf16.msrb.mxu3 %v1543_v12 }
  0x52   :  { %1017 = vmatpush.bf16.msrb.mxu2 %v1534_v15 }
  0x53   :  { %990 = vmatpush.bf16.msrb.mxu0 %v1519_v9  ;;  %v385_v9 = vsel %vm347_vm2, %v379_v2, %v380_v3 }
  0x54   :  { %1003 = vmatpush.bf16.msrb.mxu1 %v1527_v10  ;;  %1030 = vmatpush.bf16.msrb.mxu3 %v1542_v16  ;;  %v386_v21 = vsel %vm349_vm3, %v384_v8, %v385_v9 }
  0x56   :  { %1018 = vmatpush.bf16.msrb.mxu2 %v1533_v19 }
  0x57   :  { %991 = vmatpush.bf16.msrb.mxu0 %v1518_v13 }
  0x58   :  { %1004 = vmatpush.bf16.msrb.mxu1 %v1526_v14  ;;  %1031 = vmatpush.bf16.msrb.mxu3 %v1541_v20 }
  0x5a   :  { %1019 = vmatpush.bf16.msrb.mxu2 %v1532_v24 }
  0x5b   :  { %992 = vmatpush.bf16.msrb.mxu0 %v1517_v17 }
  0x5c   :  { %1005 = vmatpush.bf16.msrb.mxu1 %v1525_v18  ;;  %1032 = vmatpush.bf16.msrb.mxu3 %v1540_v25 }
  0x5e   :  { %1020 = vmatpush.bf16.msrb.mxu2 %v1531_v32 }
  0x5f   :  { %993 = vmatpush.bf16.msrb.mxu0 %v1516_v22 }
  0x60   :  { %1006 = vmatpush.bf16.msrb.mxu1 %v1524_v23  ;;  %1033 = vmatpush.bf16.msrb.mxu3 %v1539_v34 }
  0x62   :  { %1021 = vmatpush.bf16.msrb.mxu2 %v1530_v41 }
  0x63   :  { %994 = vmatpush.bf16.msrb.mxu0 %v1515_v30 }
  0x64   :  { %1007 = vmatpush.bf16.msrb.mxu1 %v1523_v31  ;;  %1034 = vmatpush.bf16.msrb.mxu3 %v1538_v42 }
  0x67   :  { %995 = vmatpush.bf16.msrb.mxu0 %v1514_v39 }
  0x68   :  { %1008 = vmatpush.bf16.msrb.mxu1 %v1522_v40 }
  0x91   :  { %v236_v29 = vpop.f32.mrf.mxu0  ;;  %v249_v33 = vpop.f32.mrf.mxu1 }
  0x92   :  { %v339_v43 = vrot.slane %v249_v33, 6 }
  0x94   :  { %v346_v50 = vsel %vm345_vm1, %v236_v29, %v339_v43 }
  0x98   :  { %v262_v44 = vpop.f32.mrf.mxu2 }
  0x99   :  { %v340_v47 = vrot.slane %v262_v44, 4  ;;  %v275_v48 = vpop.f32.mrf.mxu3  ;;  %v238_v49 = vpop.f32.mrf.mxu0 }
  0x9a   :  { %v341_v51 = vrot.slane %v275_v48, 2  ;;  %v251_v52 = vpop.f32.mrf.mxu1 }
  0x9c   :  { %v348_v54 = vsel %vm347_vm2, %v340_v47, %v341_v51 }
  0x9d   :  { %v350_v55 = vsel %vm349_vm3, %v346_v50, %v348_v54 }
  0x9e   :  { %v389_v56 = vadd.f32 %v383_v53, %v350_v55 }
  0xa0   :  { %393 = vst [vmem:[#allocation1] ss:$4 sm:$0xff] %v389_v56  ;;  %v264_v57 = vpop.f32.mrf.mxu2 }
  0xa1   :  { %v277_v61 = vpop.f32.mrf.mxu3 }
  0xa7   :  { %v288_v62 = vpop.f32.mrf.mxu0  ;;  %v396_v5 = vld.sshfl [vmem:[#allocation1] sm:$0xff pattern:$0x73625140]  ;;  %v397_v6 = vld.sshfl [vmem:[#allocation1 + $0x8] sm:$0xff pattern:$0x73625140] }
  0xa8   :  { %v301_v63 = vpop.f32.mrf.mxu1  ;;  %v412_v10 = vpack.c.bf16 %v396_v5, %v396_v5  ;;  %v413_v11 = vpack.c.bf16 %v397_v6, %v397_v6  ;;  %v398_v12 = vld.sshfl [vmem:[#allocation1 + $0x10] sm:$0xff pattern:$0x73625140]  ;;  %v399_v13 = vld.sshfl [vmem:[#allocation1 + $0x18] sm:$0xff pattern:$0x73625140] }
  0xa9   :  { %v342_v4 = vrot.slane %v301_v63, 6  ;;  %v414_v16 = vpack.c.bf16 %v398_v12, %v398_v12  ;;  %v415_v17 = vpack.c.bf16 %v399_v13, %v399_v13 }
  0xaa   :  { %944 = vmatmul.bf16.vlgmr.msra.gmra.mxu0 %v412_v10  ;;  %957 = vmatmul.bf16.vlgmr.msra.gmra.mxu1 %v413_v11 }
  0xab   :  { %v314_v7 = vpop.f32.mrf.mxu2  ;;  %v351_v18 = vsel %vm345_vm1, %v288_v62, %v342_v4  ;;  %970 = vmatmul.bf16.vlgmr.msra.gmra.mxu2 %v414_v16  ;;  %983 = vmatmul.bf16.vlgmr.msra.gmra.mxu3 %v415_v17 }
  0xac   :  { %v343_v14 = vrot.slane %v314_v7, 4  ;;  %v327_v15 = vpop.f32.mrf.mxu3 }
  0xad   :  { %v344_v19 = vrot.slane %v327_v15, 2 }
  0xaf   :  { %v290_v20 = vpop.f32.mrf.mxu0  ;;  %v352_v23 = vsel %vm347_vm2, %v343_v14, %v344_v19 }
  0xb0   :  { %v303_v22 = vpop.f32.mrf.mxu1  ;;  %v353_v24 = vsel %vm349_vm3, %v351_v18, %v352_v23 }
  0xb1   :  { %v390_v25 = vadd.f32 %v386_v21, %v353_v24 }
  0xb3   :  { %395 = vst [vmem:[#allocation1 + $0x20] ss:$4 sm:$0xff] %v390_v25  ;;  %v316_v26 = vpop.f32.mrf.mxu2 }
  0xb4   :  { %v329_v27 = vpop.f32.mrf.mxu3 }
  0xba   :  { %v400_v28 = vld.sshfl [vmem:[#allocation1 + $0x20] sm:$0xff pattern:$0x73625140]  ;;  %v401_v29 = vld.sshfl [vmem:[#allocation1 + $0x28] sm:$0xff pattern:$0x73625140] }
  0xbb   :  { %v416_v30 = vpack.c.bf16 %v400_v28, %v400_v28  ;;  %v417_v31 = vpack.c.bf16 %v401_v29, %v401_v29  ;;  %v402_v32 = vld.sshfl [vmem:[#allocation1 + $0x30] sm:$0xff pattern:$0x73625140]  ;;  %v403_v33 = vld.sshfl [vmem:[#allocation1 + $0x38] sm:$0xff pattern:$0x73625140] }
  0xbc   :  { %v418_v34 = vpack.c.bf16 %v402_v32, %v402_v32  ;;  %v419_v35 = vpack.c.bf16 %v403_v33, %v403_v33 }
  0xbd   :  { %996 = vmatmul.bf16.vlgmr.msrb.gmra.mxu0 %v416_v30  ;;  %1009 = vmatmul.bf16.vlgmr.msrb.gmra.mxu1 %v417_v31 }
  0xbe   :  { %1022 = vmatmul.bf16.vlgmr.msrb.gmra.mxu2 %v418_v34  ;;  %1035 = vmatmul.bf16.vlgmr.msrb.gmra.mxu3 %v419_v35 }
 0x127   :  { %v945_v36 = vpop.f32.mrf.mxu0  ;;  %v958_v37 = vpop.f32.mrf.mxu1 }
 0x128   :  { %v946_v39 = vadd.f32 %v1547_v38, %v945_v36 }
 0x12a   :  { %v959_v44 = vadd.f32 %v958_v37, %v946_v39 }
 0x12e   :  { %v971_v40 = vpop.f32.mrf.mxu2  ;;  %v984_v41 = vpop.f32.mrf.mxu3 }
 0x12f   :  { %v947_v42 = vpop.f32.mrf.mxu0  ;;  %v960_v43 = vpop.f32.mrf.mxu1  ;;  %v972_v45 = vadd.f32 %v971_v40, %v959_v44 }
 0x131   :  { %v985_v48 = vadd.f32 %v984_v41, %v972_v45 }
 0x136   :  { %v973_v46 = vpop.f32.mrf.mxu2  ;;  %v986_v47 = vpop.f32.mrf.mxu3 }
 0x13a   :  { %v997_v49 = vpop.f32.mrf.mxu0  ;;  %v1010_v50 = vpop.f32.mrf.mxu1 }
 0x13b   :  { %v998_v51 = vadd.f32 %v997_v49, %v985_v48 }
 0x13d   :  { %v1011_v52 = vadd.f32 %v1010_v50, %v998_v51 }
 0x141   :  { %v1023_v53 = vpop.f32.mrf.mxu2  ;;  %v1036_v54 = vpop.f32.mrf.mxu3 }
 0x142   :  { %v1024_v55 = vadd.f32 %v1023_v53, %v1011_v52  ;;  %v999_v56 = vpop.f32.mrf.mxu0  ;;  %v1012_v57 = vpop.f32.mrf.mxu1 }
 0x144   :  { %v1037_v58 = vadd.f32 %v1036_v54, %v1024_v55 }
 0x146   :  { %1041 = vst.msk [vmem:[#allocation3] sm:$0x3] %vm1040_vm4, %v1037_v58 }
 0x147   :  { %1052 = dma.vmem_to_hbm [thread:$0]  %s1048_s17, 32, %s1050_s19, [#allocation4]  }
 0x149   :  { %v1025_v59 = vpop.f32.mrf.mxu2  ;;  %v1038_v60 = vpop.f32.mrf.mxu3 }
 0x14a   :  { %1572 = dma.done.wait [#allocation4], 32  }
 0x14b   :  { %1573 = vsyncadd [#allocation4], 4294967264 }
 0x14c   :  { %1057 = vsyncpa [#allocation4], 1 }

</bundles_post_ra>
